<compile_context>
chip_gen: v6e
topology: v6e:2x2x1
jax: 0.10.0
libtpu: 0.0.40
codegen_flags: <defaults>
</compile_context>

<pallas_src>
import functools

import jax
import jax.numpy as jnp
from jax.experimental import pallas as pl
from jax.experimental.pallas import tpu as pltpu


# ---------------------------------------------------------------------------
# Kernel
# ---------------------------------------------------------------------------
def _tvae_kernel(
    x_ref, eps_ref,
    we0_ref, be0_ref, we1_ref, be1_ref,
    wmu_ref, bmu_ref, wlv_ref, blv_ref,
    wd0_ref, bd0_ref, wd1_ref, bd1_ref,
    wdo_ref, bdo_ref,
    out_ref,
):
    # Compute dtype for MXU operands (bf16 fast path or f32); accumulation is
    # always f32 via preferred_element_type.
    cdt = we0_ref.dtype

    def dense(a_f32, w_ref, b_ref, relu):
        y = jnp.dot(a_f32.astype(cdt), w_ref[...],
                    preferred_element_type=jnp.float32) + b_ref[...]
        return jnp.maximum(y, 0.0) if relu else y

    x = x_ref[...]

    # ---- Encoder MLP ----
    h = dense(x, we0_ref, be0_ref, relu=True)
    h = dense(h, we1_ref, be1_ref, relu=True)
    mu = dense(h, wmu_ref, bmu_ref, relu=False)
    logvar = dense(h, wlv_ref, blv_ref, relu=False)
    std = jnp.exp(0.5 * logvar)

    # ---- Reparameterization (f32) ----
    emb = eps_ref[...] * std + mu

    # ---- Decoder MLP ----
    d = dense(emb, wd0_ref, bd0_ref, relu=True)
    d = dense(d, wd1_ref, bd1_ref, relu=True)
    rec = dense(d, wdo_ref, bdo_ref, relu=False)

    # Single lane-dense output slab: [rec | mu | logvar].  All widths are
    # multiples of 128, so every store is an unmasked full-lane vst.
    dp = wdo_ref.shape[1]   # padded data dim
    ep = wmu_ref.shape[1]   # padded embedding dim
    out_ref[:, 0:dp] = rec
    out_ref[:, dp:dp + ep] = mu
    out_ref[:, dp + ep:dp + 2 * ep] = logvar


# ---------------------------------------------------------------------------
# Parameter construction / padding
# ---------------------------------------------------------------------------
def init_tvae_params(key, data_dim, embedding_dim, compress_dims, decompress_dims):
    """Deterministic synthetic parameter init (shapes match the PyTorch module)."""
    def linear(key, fan_in, fan_out):
        kw, kb = jax.random.split(key)
        bound = 1.0 / jnp.sqrt(fan_in)
        # Stored already transposed: [in, out]
        w = jax.random.uniform(kw, (fan_in, fan_out), jnp.float32, -bound, bound)
        b = jax.random.uniform(kb, (1, fan_out), jnp.float32, -bound, bound)
        return w, b

    keys = jax.random.split(key, 7)
    params = {}
    params["we0"], params["be0"] = linear(keys[0], data_dim, compress_dims[0])
    params["we1"], params["be1"] = linear(keys[1], compress_dims[0], compress_dims[1])
    params["wmu"], params["bmu"] = linear(keys[2], compress_dims[1], embedding_dim)
    params["wlv"], params["blv"] = linear(keys[3], compress_dims[1], embedding_dim)
    params["wd0"], params["bd0"] = linear(keys[4], embedding_dim, decompress_dims[0])
    params["wd1"], params["bd1"] = linear(keys[5], decompress_dims[0], decompress_dims[1])
    params["wdo"], params["bdo"] = linear(keys[6], decompress_dims[1], data_dim)
    # decoder.sigma = Parameter(ones(data_dim) * 0.1) -- pure passthrough
    params["sigma"] = jnp.ones((data_dim,), jnp.float32) * 0.1
    return params


def _round_up(x, m):
    return (x + m - 1) // m * m


def _pad2(a, rows, cols, dtype):
    out = jnp.zeros((rows, cols), dtype)
    return out.at[:a.shape[0], :a.shape[1]].set(a.astype(dtype))


def pad_tvae_params(params, compute_dtype=jnp.bfloat16):
    """Zero-pad every feature dim to a multiple of 128 (lane width) and cast
    matmul weights to the compute dtype (biases stay f32).  Done once on host.
    The zero rows/cols are mathematically inert (zero contributions, zero bias)."""
    data_dim, c0 = params["we0"].shape
    c1 = params["we1"].shape[1]
    emb = params["wmu"].shape[1]
    d0 = params["wd0"].shape[1]
    d1 = params["wd1"].shape[1]

    dpad = _round_up(data_dim, 128)
    c0p, c1p = _round_up(c0, 128), _round_up(c1, 128)
    epad = _round_up(emb, 128)
    d0p, d1p = _round_up(d0, 128), _round_up(d1, 128)

    p = {}
    p["we0"] = _pad2(params["we0"], dpad, c0p, compute_dtype)
    p["be0"] = _pad2(params["be0"], 1, c0p, jnp.float32)
    p["we1"] = _pad2(params["we1"], c0p, c1p, compute_dtype)
    p["be1"] = _pad2(params["be1"], 1, c1p, jnp.float32)
    p["wmu"] = _pad2(params["wmu"], c1p, epad, compute_dtype)
    p["bmu"] = _pad2(params["bmu"], 1, epad, jnp.float32)
    p["wlv"] = _pad2(params["wlv"], c1p, epad, compute_dtype)
    p["blv"] = _pad2(params["blv"], 1, epad, jnp.float32)
    p["wd0"] = _pad2(params["wd0"], epad, d0p, compute_dtype)
    p["bd0"] = _pad2(params["bd0"], 1, d0p, jnp.float32)
    p["wd1"] = _pad2(params["wd1"], d0p, d1p, compute_dtype)
    p["bd1"] = _pad2(params["bd1"], 1, d1p, jnp.float32)
    p["wdo"] = _pad2(params["wdo"], d1p, dpad, compute_dtype)
    p["bdo"] = _pad2(params["bdo"], 1, dpad, jnp.float32)
    p["sigma"] = params["sigma"]  # unpadded passthrough
    return p


_WEIGHT_NAMES = ["we0", "be0", "we1", "be1", "wmu", "bmu", "wlv", "blv",
                 "wd0", "bd0", "wd1", "bd1", "wdo", "bdo"]


# ---------------------------------------------------------------------------
# Forward wrapper
# ---------------------------------------------------------------------------
@functools.partial(jax.jit, static_argnames=("batch_tile",))
def tvae_forward(real, eps, pparams, batch_tile=256):
    """real: [B, data_dim] f32, eps: [B, embedding_dim] f32,
    pparams: output of pad_tvae_params.  Returns (rec, sigmas, mu, logvar)."""
    B, data_dim = real.shape
    emb_dim = eps.shape[1]

    din_p = pparams["we0"].shape[0]   # padded data dim (input side)
    dp = pparams["wdo"].shape[1]      # padded data dim (output side, == din_p)
    ep = pparams["wmu"].shape[1]      # padded embedding dim
    out_w = dp + 2 * ep               # [rec | mu | logvar] slab width

    # Ragged-batch handling: pad rows up to a multiple of batch_tile (no
    # divisibility assert); padded rows are discarded after the call.
    bp = _round_up(B, batch_tile)
    grid = (bp // batch_tile,)

    real_p = jnp.zeros((bp, din_p), jnp.float32).at[:B, :data_dim].set(real)
    eps_p = jnp.zeros((bp, ep), jnp.float32).at[:B, :emb_dim].set(eps)

    def batched(feat):
        return pl.BlockSpec((batch_tile, feat), lambda i: (i, 0))

    def replicated(shape):
        # Constant index_map: fetched once, never re-DMA'd across grid steps.
        return pl.BlockSpec(shape, lambda i: (0,) * len(shape))

    weight_specs = [replicated(pparams[n].shape) for n in _WEIGHT_NAMES]

    # --- Advisory cost estimate for XLA's scheduler ---
    flops = 2 * bp * sum(
        pparams[n].shape[0] * pparams[n].shape[1]
        for n in ["we0", "we1", "wmu", "wlv", "wd0", "wd1", "wdo"])
    transcendentals = bp * ep  # exp in the reparameterization
    weight_bytes = sum(int(pparams[n].size) * pparams[n].dtype.itemsize
                       for n in _WEIGHT_NAMES)
    bytes_accessed = (real_p.size + eps_p.size + bp * out_w) * 4 + weight_bytes
    cost = pl.CostEstimate(flops=int(flops),
                           transcendentals=int(transcendentals),
                           bytes_accessed=int(bytes_accessed))

    # --- Explicit VMEM budget: double-buffered streamed tiles + double-buffered
    # weights + slack; clamped to [16 MiB, 48 MiB] so it is safe on v7x (64 MiB
    # physical) as well as v5e/v6e (128 MiB). ---
    stream_bytes = batch_tile * (din_p + ep + out_w) * 4
    vmem_limit = int(min(48 * 2**20,
                         max(16 * 2**20, 3 * (2 * weight_bytes + 2 * stream_bytes))))

    out = pl.pallas_call(
        _tvae_kernel,
        out_shape=jax.ShapeDtypeStruct((bp, out_w), jnp.float32),
        grid_spec=pltpu.PrefetchScalarGridSpec(
            num_scalar_prefetch=0,
            grid=grid,
            in_specs=[batched(din_p), batched(ep)] + weight_specs,
            out_specs=batched(out_w),
        ),
        compiler_params=pltpu.CompilerParams(
            dimension_semantics=("parallel",),   # shards steps across v7x's 2 TCs
            vmem_limit_bytes=vmem_limit,
        ),
        cost_estimate=cost,
    )(real_p, eps_p, *[pparams[n] for n in _WEIGHT_NAMES])

    # Split the lane-dense slab and strip padding (free layout plumbing).
    rec = out[:B, :data_dim]
    mu = out[:B, dp:dp + emb_dim]
    logvar = out[:B, dp + ep:dp + ep + emb_dim]
    sigmas = pparams["sigma"]  # decoder.sigma: returned as-is (no compute)
    return rec, sigmas, mu, logvar


# ---------------------------------------------------------------------------
# Plain-JAX reference (f32, unpadded) for correctness checking
# ---------------------------------------------------------------------------
def tvae_forward_ref(real, eps, params):
    h = jnp.maximum(real @ params["we0"] + params["be0"], 0.0)
    h = jnp.maximum(h @ params["we1"] + params["be1"], 0.0)
    mu = h @ params["wmu"] + params["bmu"]
    logvar = h @ params["wlv"] + params["blv"]
    std = jnp.exp(0.5 * logvar)
    emb = eps * std + mu
    d = jnp.maximum(emb @ params["wd0"] + params["bd0"], 0.0)
    d = jnp.maximum(d @ params["wd1"] + params["bd1"], 0.0)
    rec = d @ params["wdo"] + params["bdo"]
    return rec, params["sigma"], mu, logvar


if __name__ == "__main__":
    # Small shapes consistent with the module's forward.
    DATA_DIM = 32
    EMBEDDING_DIM = 32
    COMPRESS_DIMS = (64, 64)
    DECOMPRESS_DIMS = (64, 64)
    BATCH = 20  # deliberately NOT a multiple of the batch tile (ragged handling)

    key = jax.random.PRNGKey(0)
    k_params, k_x, k_eps = jax.random.split(key, 3)

    params = init_tvae_params(k_params, DATA_DIM, EMBEDDING_DIM,
                              COMPRESS_DIMS, DECOMPRESS_DIMS)
    real = jax.random.normal(k_x, (BATCH, DATA_DIM), jnp.float32)
    # eps ~ randn_like(std): shape (BATCH, EMBEDDING_DIM), drawn outside kernel.
    eps = jax.random.normal(k_eps, (BATCH, EMBEDDING_DIM), jnp.float32)

    rec_r, sig_r, mu_r, lv_r = tvae_forward_ref(real, eps, params)

    # 1) f32-compute variant: tight structural check against the reference.
    pp32 = pad_tvae_params(params, jnp.float32)
    rec32, sig32, mu32, lv32 = tvae_forward(real, eps, pp32)
    jax.block_until_ready((rec32, sig32, mu32, lv32))
    assert jnp.allclose(rec32, rec_r, atol=1e-4, rtol=1e-4)
    assert jnp.allclose(mu32, mu_r, atol=1e-5, rtol=1e-5)
    assert jnp.allclose(lv32, lv_r, atol=1e-5, rtol=1e-5)
    assert jnp.allclose(sig32, sig_r)

    # 2) bf16-matmul fast path (f32 accumulation): loose tolerance vs f32 ref.
    ppbf = pad_tvae_params(params, jnp.bfloat16)
    rec, sigmas, mu, logvar = tvae_forward(real, eps, ppbf)
    jax.block_until_ready((rec, sigmas, mu, logvar))
    assert jnp.allclose(mu, mu_r, atol=5e-2, rtol=5e-2)
    assert jnp.allclose(logvar, lv_r, atol=5e-2, rtol=5e-2)
    assert jnp.allclose(rec, rec_r, atol=8e-2, rtol=8e-2)
    assert jnp.allclose(sigmas, sig_r)

    print("KERNEL_OK")
</pallas_src>

<mosaic_0001>
module attributes {stable_mosaic.version = 11 : i64} {
  func.func @_tvae_kernel(%arg0: i32, %arg1: memref<256x128xf32, #tpu.memory_space<vmem>>, %arg2: memref<256x128xf32, #tpu.memory_space<vmem>>, %arg3: memref<128x128xf32, #tpu.memory_space<vmem>>, %arg4: memref<1x128xf32, #tpu.memory_space<vmem>>, %arg5: memref<128x128xf32, #tpu.memory_space<vmem>>, %arg6: memref<1x128xf32, #tpu.memory_space<vmem>>, %arg7: memref<128x128xf32, #tpu.memory_space<vmem>>, %arg8: memref<1x128xf32, #tpu.memory_space<vmem>>, %arg9: memref<128x128xf32, #tpu.memory_space<vmem>>, %arg10: memref<1x128xf32, #tpu.memory_space<vmem>>, %arg11: memref<128x128xf32, #tpu.memory_space<vmem>>, %arg12: memref<1x128xf32, #tpu.memory_space<vmem>>, %arg13: memref<128x128xf32, #tpu.memory_space<vmem>>, %arg14: memref<1x128xf32, #tpu.memory_space<vmem>>, %arg15: memref<128x128xf32, #tpu.memory_space<vmem>>, %arg16: memref<1x128xf32, #tpu.memory_space<vmem>>, %arg17: memref<256x384xf32, #tpu.memory_space<vmem>>) attributes {dimension_semantics = [#tpu.dimension_semantics<parallel>], iteration_bounds = array<i64: 1>, scalar_prefetch = 0 : i64, scratch_operands = 0 : i64, tpu.core_type = #tpu.core_type<tc>, window_params = [{transform_indices = @transform_0, window_bounds = array<i64: 256, 128>}, {transform_indices = @transform_1, window_bounds = array<i64: 256, 128>}, {pipeline_mode = #tpu.pipeline_mode<synchronous>, transform_indices = @transform_2, window_bounds = array<i64: 128, 128>}, {pipeline_mode = #tpu.pipeline_mode<synchronous>, transform_indices = @transform_3, window_bounds = array<i64: 1, 128>}, {pipeline_mode = #tpu.pipeline_mode<synchronous>, transform_indices = @transform_4, window_bounds = array<i64: 128, 128>}, {pipeline_mode = #tpu.pipeline_mode<synchronous>, transform_indices = @transform_5, window_bounds = array<i64: 1, 128>}, {pipeline_mode = #tpu.pipeline_mode<synchronous>, transform_indices = @transform_6, window_bounds = array<i64: 128, 128>}, {pipeline_mode = #tpu.pipeline_mode<synchronous>, transform_indices = @transform_7, window_bounds = array<i64: 1, 128>}, {pipeline_mode = #tpu.pipeline_mode<synchronous>, transform_indices = @transform_8, window_bounds = array<i64: 128, 128>}, {pipeline_mode = #tpu.pipeline_mode<synchronous>, transform_indices = @transform_9, window_bounds = array<i64: 1, 128>}, {pipeline_mode = #tpu.pipeline_mode<synchronous>, transform_indices = @transform_10, window_bounds = array<i64: 128, 128>}, {pipeline_mode = #tpu.pipeline_mode<synchronous>, transform_indices = @transform_11, window_bounds = array<i64: 1, 128>}, {pipeline_mode = #tpu.pipeline_mode<synchronous>, transform_indices = @transform_12, window_bounds = array<i64: 128, 128>}, {pipeline_mode = #tpu.pipeline_mode<synchronous>, transform_indices = @transform_13, window_bounds = array<i64: 1, 128>}, {pipeline_mode = #tpu.pipeline_mode<synchronous>, transform_indices = @transform_14, window_bounds = array<i64: 128, 128>}, {pipeline_mode = #tpu.pipeline_mode<synchronous>, transform_indices = @transform_15, window_bounds = array<i64: 1, 128>}, {transform_indices = @transform_16, window_bounds = array<i64: 256, 384>}]} {
    %c0 = arith.constant 0 : index
    %c0_0 = arith.constant 0 : index
    %0 = vector.load %arg1[%c0, %c0_0] : memref<256x128xf32, #tpu.memory_space<vmem>>, vector<256x128xf32>
    %c0_1 = arith.constant 0 : index
    %c0_2 = arith.constant 0 : index
    %1 = vector.load %arg3[%c0_1, %c0_2] : memref<128x128xf32, #tpu.memory_space<vmem>>, vector<128x128xf32>
    %cst = arith.constant dense<0.000000e+00> : vector<256x128xf32>
    %2 = tpu.matmul %0, %1, %cst {dimension_numbers = #tpu.dot_dimension_numbers<[1], [0], [0], [1], [0, 0, 1, 1], [], []>} : vector<256x128xf32>, vector<128x128xf32>, vector<256x128xf32> -> vector<256x128xf32>
    %c0_3 = arith.constant 0 : index
    %c0_4 = arith.constant 0 : index
    %3 = vector.load %arg4[%c0_3, %c0_4] : memref<1x128xf32, #tpu.memory_space<vmem>>, vector<1x128xf32>
    %4 = vector.broadcast %3 : vector<1x128xf32> to vector<256x128xf32>
    %5 = arith.addf %2, %4 : vector<256x128xf32>
    %cst_5 = arith.constant 0.000000e+00 : f32
    %6 = vector.broadcast %cst_5 : f32 to vector<256x128xf32>
    %7 = arith.maximumf %5, %6 : vector<256x128xf32>
    %c0_6 = arith.constant 0 : index
    %c0_7 = arith.constant 0 : index
    %8 = vector.load %arg5[%c0_6, %c0_7] : memref<128x128xf32, #tpu.memory_space<vmem>>, vector<128x128xf32>
    %cst_8 = arith.constant dense<0.000000e+00> : vector<256x128xf32>
    %9 = tpu.matmul %7, %8, %cst_8 {dimension_numbers = #tpu.dot_dimension_numbers<[1], [0], [0], [1], [0, 0, 1, 1], [], []>} : vector<256x128xf32>, vector<128x128xf32>, vector<256x128xf32> -> vector<256x128xf32>
    %c0_9 = arith.constant 0 : index
    %c0_10 = arith.constant 0 : index
    %10 = vector.load %arg6[%c0_9, %c0_10] : memref<1x128xf32, #tpu.memory_space<vmem>>, vector<1x128xf32>
    %11 = vector.broadcast %10 : vector<1x128xf32> to vector<256x128xf32>
    %12 = arith.addf %9, %11 : vector<256x128xf32>
    %cst_11 = arith.constant 0.000000e+00 : f32
    %13 = vector.broadcast %cst_11 : f32 to vector<256x128xf32>
    %14 = arith.maximumf %12, %13 : vector<256x128xf32>
    %c0_12 = arith.constant 0 : index
    %c0_13 = arith.constant 0 : index
    %15 = vector.load %arg7[%c0_12, %c0_13] : memref<128x128xf32, #tpu.memory_space<vmem>>, vector<128x128xf32>
    %cst_14 = arith.constant dense<0.000000e+00> : vector<256x128xf32>
    %16 = tpu.matmul %14, %15, %cst_14 {dimension_numbers = #tpu.dot_dimension_numbers<[1], [0], [0], [1], [0, 0, 1, 1], [], []>} : vector<256x128xf32>, vector<128x128xf32>, vector<256x128xf32> -> vector<256x128xf32>
    %c0_15 = arith.constant 0 : index
    %c0_16 = arith.constant 0 : index
    %17 = vector.load %arg8[%c0_15, %c0_16] : memref<1x128xf32, #tpu.memory_space<vmem>>, vector<1x128xf32>
    %18 = vector.broadcast %17 : vector<1x128xf32> to vector<256x128xf32>
    %19 = arith.addf %16, %18 : vector<256x128xf32>
    %c0_17 = arith.constant 0 : index
    %c0_18 = arith.constant 0 : index
    %20 = vector.load %arg9[%c0_17, %c0_18] : memref<128x128xf32, #tpu.memory_space<vmem>>, vector<128x128xf32>
    %cst_19 = arith.constant dense<0.000000e+00> : vector<256x128xf32>
    %21 = tpu.matmul %14, %20, %cst_19 {dimension_numbers = #tpu.dot_dimension_numbers<[1], [0], [0], [1], [0, 0, 1, 1], [], []>} : vector<256x128xf32>, vector<128x128xf32>, vector<256x128xf32> -> vector<256x128xf32>
    %c0_20 = arith.constant 0 : index
    %c0_21 = arith.constant 0 : index
    %22 = vector.load %arg10[%c0_20, %c0_21] : memref<1x128xf32, #tpu.memory_space<vmem>>, vector<1x128xf32>
    %23 = vector.broadcast %22 : vector<1x128xf32> to vector<256x128xf32>
    %24 = arith.addf %21, %23 : vector<256x128xf32>
    %cst_22 = arith.constant 5.000000e-01 : f32
    %25 = vector.broadcast %cst_22 : f32 to vector<256x128xf32>
    %26 = arith.mulf %25, %24 : vector<256x128xf32>
    %27 = math.exp %26 : vector<256x128xf32>
    %c0_23 = arith.constant 0 : index
    %c0_24 = arith.constant 0 : index
    %28 = vector.load %arg2[%c0_23, %c0_24] : memref<256x128xf32, #tpu.memory_space<vmem>>, vector<256x128xf32>
    %29 = arith.mulf %28, %27 : vector<256x128xf32>
    %30 = arith.addf %29, %19 : vector<256x128xf32>
    %c0_25 = arith.constant 0 : index
    %c0_26 = arith.constant 0 : index
    %31 = vector.load %arg11[%c0_25, %c0_26] : memref<128x128xf32, #tpu.memory_space<vmem>>, vector<128x128xf32>
    %cst_27 = arith.constant dense<0.000000e+00> : vector<256x128xf32>
    %32 = tpu.matmul %30, %31, %cst_27 {dimension_numbers = #tpu.dot_dimension_numbers<[1], [0], [0], [1], [0, 0, 1, 1], [], []>} : vector<256x128xf32>, vector<128x128xf32>, vector<256x128xf32> -> vector<256x128xf32>
    %c0_28 = arith.constant 0 : index
    %c0_29 = arith.constant 0 : index
    %33 = vector.load %arg12[%c0_28, %c0_29] : memref<1x128xf32, #tpu.memory_space<vmem>>, vector<1x128xf32>
    %34 = vector.broadcast %33 : vector<1x128xf32> to vector<256x128xf32>
    %35 = arith.addf %32, %34 : vector<256x128xf32>
    %cst_30 = arith.constant 0.000000e+00 : f32
    %36 = vector.broadcast %cst_30 : f32 to vector<256x128xf32>
    %37 = arith.maximumf %35, %36 : vector<256x128xf32>
    %c0_31 = arith.constant 0 : index
    %c0_32 = arith.constant 0 : index
    %38 = vector.load %arg13[%c0_31, %c0_32] : memref<128x128xf32, #tpu.memory_space<vmem>>, vector<128x128xf32>
    %cst_33 = arith.constant dense<0.000000e+00> : vector<256x128xf32>
    %39 = tpu.matmul %37, %38, %cst_33 {dimension_numbers = #tpu.dot_dimension_numbers<[1], [0], [0], [1], [0, 0, 1, 1], [], []>} : vector<256x128xf32>, vector<128x128xf32>, vector<256x128xf32> -> vector<256x128xf32>
    %c0_34 = arith.constant 0 : index
    %c0_35 = arith.constant 0 : index
    %40 = vector.load %arg14[%c0_34, %c0_35] : memref<1x128xf32, #tpu.memory_space<vmem>>, vector<1x128xf32>
    %41 = vector.broadcast %40 : vector<1x128xf32> to vector<256x128xf32>
    %42 = arith.addf %39, %41 : vector<256x128xf32>
    %cst_36 = arith.constant 0.000000e+00 : f32
    %43 = vector.broadcast %cst_36 : f32 to vector<256x128xf32>
    %44 = arith.maximumf %42, %43 : vector<256x128xf32>
    %c0_37 = arith.constant 0 : index
    %c0_38 = arith.constant 0 : index
    %45 = vector.load %arg15[%c0_37, %c0_38] : memref<128x128xf32, #tpu.memory_space<vmem>>, vector<128x128xf32>
    %cst_39 = arith.constant dense<0.000000e+00> : vector<256x128xf32>
    %46 = tpu.matmul %44, %45, %cst_39 {dimension_numbers = #tpu.dot_dimension_numbers<[1], [0], [0], [1], [0, 0, 1, 1], [], []>} : vector<256x128xf32>, vector<128x128xf32>, vector<256x128xf32> -> vector<256x128xf32>
    %c0_40 = arith.constant 0 : index
    %c0_41 = arith.constant 0 : index
    %47 = vector.load %arg16[%c0_40, %c0_41] : memref<1x128xf32, #tpu.memory_space<vmem>>, vector<1x128xf32>
    %48 = vector.broadcast %47 : vector<1x128xf32> to vector<256x128xf32>
    %49 = arith.addf %46, %48 : vector<256x128xf32>
    %c0_42 = arith.constant 0 : index
    %c0_43 = arith.constant 0 : index
    %50 = vector.load %arg17[%c0_42, %c0_43] : memref<256x384xf32, #tpu.memory_space<vmem>>, vector<256x128xf32>
    tpu.vector_store %arg17[%c0_42, %c0_43], %49 {strides = array<i32>} : memref<256x384xf32, #tpu.memory_space<vmem>>, vector<256x128xf32>,
    %c0_44 = arith.constant 0 : index
    %c128 = arith.constant 128 : index
    %51 = vector.load %arg17[%c0_44, %c128] : memref<256x384xf32, #tpu.memory_space<vmem>>, vector<256x128xf32>
    tpu.vector_store %arg17[%c0_44, %c128], %19 {strides = array<i32>} : memref<256x384xf32, #tpu.memory_space<vmem>>, vector<256x128xf32>,
    %c0_45 = arith.constant 0 : index
    %c256 = arith.constant 256 : index
    %52 = vector.load %arg17[%c0_45, %c256] : memref<256x384xf32, #tpu.memory_space<vmem>>, vector<256x128xf32>
    tpu.vector_store %arg17[%c0_45, %c256], %24 {strides = array<i32>} : memref<256x384xf32, #tpu.memory_space<vmem>>, vector<256x128xf32>,
    return
  }
  func.func @transform_0(%arg0: i32) -> (i32, i32) {
    %c0_i32 = arith.constant 0 : i32
    %c0_i32_0 = arith.constant 0 : i32
    return %arg0, %c0_i32 : i32, i32
  }
  func.func @transform_1(%arg0: i32) -> (i32, i32) {
    %c0_i32 = arith.constant 0 : i32
    %c0_i32_0 = arith.constant 0 : i32
    return %arg0, %c0_i32 : i32, i32
  }
  func.func @transform_2(%arg0: i32) -> (i32, i32) {
    %c0_i32 = arith.constant 0 : i32
    %c0_i32_0 = arith.constant 0 : i32
    %c0_i32_1 = arith.constant 0 : i32
    return %c0_i32, %c0_i32_0 : i32, i32
  }
  func.func @transform_3(%arg0: i32) -> (i32, i32) {
    %c0_i32 = arith.constant 0 : i32
    %c0_i32_0 = arith.constant 0 : i32
    %c0_i32_1 = arith.constant 0 : i32
    return %c0_i32, %c0_i32_0 : i32, i32
  }
  func.func @transform_4(%arg0: i32) -> (i32, i32) {
    %c0_i32 = arith.constant 0 : i32
    %c0_i32_0 = arith.constant 0 : i32
    %c0_i32_1 = arith.constant 0 : i32
    return %c0_i32, %c0_i32_0 : i32, i32
  }
  func.func @transform_5(%arg0: i32) -> (i32, i32) {
    %c0_i32 = arith.constant 0 : i32
    %c0_i32_0 = arith.constant 0 : i32
    %c0_i32_1 = arith.constant 0 : i32
    return %c0_i32, %c0_i32_0 : i32, i32
  }
  func.func @transform_6(%arg0: i32) -> (i32, i32) {
    %c0_i32 = arith.constant 0 : i32
    %c0_i32_0 = arith.constant 0 : i32
    %c0_i32_1 = arith.constant 0 : i32
    return %c0_i32, %c0_i32_0 : i32, i32
  }
  func.func @transform_7(%arg0: i32) -> (i32, i32) {
    %c0_i32 = arith.constant 0 : i32
    %c0_i32_0 = arith.constant 0 : i32
    %c0_i32_1 = arith.constant 0 : i32
    return %c0_i32, %c0_i32_0 : i32, i32
  }
  func.func @transform_8(%arg0: i32) -> (i32, i32) {
    %c0_i32 = arith.constant 0 : i32
    %c0_i32_0 = arith.constant 0 : i32
    %c0_i32_1 = arith.constant 0 : i32
    return %c0_i32, %c0_i32_0 : i32, i32
  }
  func.func @transform_9(%arg0: i32) -> (i32, i32) {
    %c0_i32 = arith.constant 0 : i32
    %c0_i32_0 = arith.constant 0 : i32
    %c0_i32_1 = arith.constant 0 : i32
    return %c0_i32, %c0_i32_0 : i32, i32
  }
  func.func @transform_10(%arg0: i32) -> (i32, i32) {
    %c0_i32 = arith.constant 0 : i32
    %c0_i32_0 = arith.constant 0 : i32
    %c0_i32_1 = arith.constant 0 : i32
    return %c0_i32, %c0_i32_0 : i32, i32
  }
  func.func @transform_11(%arg0: i32) -> (i32, i32) {
    %c0_i32 = arith.constant 0 : i32
    %c0_i32_0 = arith.constant 0 : i32
    %c0_i32_1 = arith.constant 0 : i32
    return %c0_i32, %c0_i32_0 : i32, i32
  }
  func.func @transform_12(%arg0: i32) -> (i32, i32) {
    %c0_i32 = arith.constant 0 : i32
    %c0_i32_0 = arith.constant 0 : i32
    %c0_i32_1 = arith.constant 0 : i32
    return %c0_i32, %c0_i32_0 : i32, i32
  }
  func.func @transform_13(%arg0: i32) -> (i32, i32) {
    %c0_i32 = arith.constant 0 : i32
    %c0_i32_0 = arith.constant 0 : i32
    %c0_i32_1 = arith.constant 0 : i32
    return %c0_i32, %c0_i32_0 : i32, i32
  }
  func.func @transform_14(%arg0: i32) -> (i32, i32) {
    %c0_i32 = arith.constant 0 : i32
    %c0_i32_0 = arith.constant 0 : i32
    %c0_i32_1 = arith.constant 0 : i32
    return %c0_i32, %c0_i32_0 : i32, i32
  }
  func.func @transform_15(%arg0: i32) -> (i32, i32) {
    %c0_i32 = arith.constant 0 : i32
    %c0_i32_0 = arith.constant 0 : i32
    %c0_i32_1 = arith.constant 0 : i32
    return %c0_i32, %c0_i32_0 : i32, i32
  }
  func.func @transform_16(%arg0: i32) -> (i32, i32) {
    %c0_i32 = arith.constant 0 : i32
    %c0_i32_0 = arith.constant 0 : i32
    return %arg0, %c0_i32 : i32, i32
  }
}

</mosaic_0001>

<bundles_post_ra>
// kernel: tvae_forward.1
= control target key start
LH: loop header
LB: loop body
LE: loop exit
PB: predicated region body
PF: predicated region fallthrough
CT: control target
= control target key end

     0   :  { %s4534_s0 = inlined_call_operand.vmem [shape: f32[256,128], index: 0, kind: input, shape index: {}]   ;;  %s4535_s1 = inlined_call_operand.vmem [shape: f32[256,128], index: 1, kind: input, shape index: {}]   ;;  %s4536_s2 = inlined_call_operand.vmem [shape: f32[128,128], index: 2, kind: input, shape index: {}]   ;;  %s4537_s3 = inlined_call_operand.vmem [shape: f32[1,128], index: 3, kind: input, shape index: {}]   ;;  %s4538_s4 = inlined_call_operand.vmem [shape: f32[128,128], index: 4, kind: input, shape index: {}]   ;;  %s4539_s5 = inlined_call_operand.vmem [shape: f32[1,128], index: 5, kind: input, shape index: {}]   ;;  %s4540_s6 = inlined_call_operand.vmem [shape: f32[128,128], index: 6, kind: input, shape index: {}]   ;;  %s4541_s7 = inlined_call_operand.vmem [shape: f32[1,128], index: 7, kind: input, shape index: {}]   ;;  %s4542_s8 = inlined_call_operand.vmem [shape: f32[128,128], index: 8, kind: input, shape index: {}]   ;;  %s4543_s9 = inlined_call_operand.vmem [shape: f32[1,128], index: 9, kind: input, shape index: {}]   ;;  %s4544_s10 = inlined_call_operand.hbm [shape: f32[128,128], index: 10, kind: input, shape index: {}]   ;;  %s4545_s11 = inlined_call_operand.vmem [shape: f32[1,128], index: 11, kind: input, shape index: {}]   ;;  %s4546_s12 = inlined_call_operand.hbm [shape: f32[128,128], index: 12, kind: input, shape index: {}]   ;;  %s4547_s13 = inlined_call_operand.vmem [shape: f32[1,128], index: 13, kind: input, shape index: {}]   ;;  %s4548_s14 = inlined_call_operand.hbm [shape: f32[128,128], index: 14, kind: input, shape index: {}]   ;;  %s4549_s15 = inlined_call_operand.vmem [shape: f32[1,128], index: 15, kind: input, shape index: {}]   ;;  %s4550_s16 = inlined_call_operand.vmem [shape: f32[256,384], index: 16, kind: output, shape index: {}]  }
   0x1   :  { %4552 = sst [smem:[#allocation9_spill]] %s4534_s0 }
   0x2   :  { %21 = vsyncpa [#allocation3], 0 }
   0x3   :  { %22 = vsyncpa [#allocation5], 0  ;;  %s3352_s21 = smov [#allocation4]   ;;  %s3353_s23 = smov [#allocation2]  }
   0x4   :  { %s62_s22 = sshll.u32 %s3352_s21, 4  ;;  %s48_s24 = sshll.u32 %s3353_s23, 4  ;;  %s63_s22 = int_to_ptr.vmem [resolvable:$true] %s62_s22  ;;  %s49_s24 = int_to_ptr.vmem [resolvable:$true] %s48_s24 }
   0x5   :  { %s3296_s25 = scalar_lea.vmem %s63_s22, 2048  ;;  %p3301_p1 = scmp.lt.s32.totalorder %s63_s22, %s63_s22 }
   0x6   :  { %p3297_p0 = scmp.ne.s32.totalorder %s63_s22, %s3296_s25  ;;  %p3302_p2 = scmp.lt.s32.totalorder %s3296_s25, %s3296_s25 }
   0x8   :  { %p3303_p3 = por %p3302_p2, %p3301_p1 }
   0xa   :  { %p3304_p4 = pnand %p3303_p3, %p3297_p0 }
   0xc   :  { %3307 = shalt.err (!%p3304_p4)
}
   0xd   :  { %s3354_s26 = smov 128   ;;  %s3355_s27 = smov 8  }
   0xe   :  { %68 = dma.hbm_to_vmem [thread:$0]  %s4546_s12, 2048, %s63_s22, [#allocation5], %s3354_s26, %s3354_s26, %s3355_s27  }
   0xf   :  { %s3316_s30 = scalar_lea.vmem %s49_s24, 2048  ;;  %p3321_p6 = scmp.lt.s32.totalorder %s49_s24, %s49_s24 }
  0x10   :  { %p3317_p5 = scmp.ne.s32.totalorder %s49_s24, %s3316_s30  ;;  %p3322_p7 = scmp.lt.s32.totalorder %s3316_s30, %s3316_s30 }
  0x12   :  { %p3323_p8 = por %p3322_p7, %p3321_p6 }
  0x14   :  { %p3324_p9 = pnand %p3323_p8, %p3317_p5 }
  0x16   :  { %3327 = shalt.err (!%p3324_p9)
}
  0x17   :  { %54 = dma.hbm_to_vmem [thread:$0]  %s4544_s10, 2048, %s49_s24, [#allocation3], %s3354_s26, %s3354_s26, %s3355_s27  }
  0x18   :  { %s3356_s18 = smov [#allocation6]  }
  0x19   :  { %s76_s19 = sshll.u32 %s3356_s18, 4  ;;  %s77_s19 = int_to_ptr.vmem [resolvable:$true] %s76_s19 }
  0x1a   :  { %s3336_s20 = scalar_lea.vmem %s77_s19, 2048  ;;  %p3341_p11 = scmp.lt.s32.totalorder %s77_s19, %s77_s19 }
  0x1b   :  { %p3337_p10 = scmp.ne.s32.totalorder %s77_s19, %s3336_s20  ;;  %p3342_p12 = scmp.lt.s32.totalorder %s3336_s20, %s3336_s20 }
  0x1d   :  { %p3343_p13 = por %p3342_p12, %p3341_p11 }
  0x1f   :  { %p3344_p0 = pnand %p3343_p13, %p3337_p10 }
  0x21   :  { %3347 = shalt.err (!%p3344_p0)
}
  0x22   :  { %82 = dma.hbm_to_vmem [thread:$0]  %s4548_s14, 2048, %s77_s19, [#allocation5], %s3354_s26, %s3354_s26, %s3355_s27  }
  0x23   :  { %3348 = dma.done.wait [#allocation3], 2048  }
  0x24   :  { %3349 = vsyncadd [#allocation3], 4294965248 }
  0x25   :  { %3350 = dma.done.wait [#allocation5], 4096  }
  0x26   :  { %3351 = vsyncadd [#allocation5], 4294963200  ;;  %v141_v0 = vld [vmem:[%s4536_s2 + $0x78] sm:$0xff]  ;;  %v140_v1 = vld [vmem:[%s4536_s2 + $0x70] sm:$0xff]  ;;  %s4553_s30 = sld [smem:[#allocation9_spill]] }
  0x27   :  { %2627 = vmatprep.subr.mxu0 %v141_v0  ;;  %3187 = vmatprep.subr.mxu1 %v141_v0  ;;  %v139_v2 = vld [vmem:[%s4536_s2 + $0x68] sm:$0xff]  ;;  %v138_v3 = vld [vmem:[%s4536_s2 + $0x60] sm:$0xff]  ;;  %v137_v5 = vld [vmem:[%s4536_s2 + $0x58] sm:$0xff] }
  0x28   :  { %2628 = vmatpush3.msra.mxu0 %v141_v0  ;;  %3203 = vmatpush3.msra.mxu1 %v141_v0  ;;  %v136_v6 = vld [vmem:[%s4536_s2 + $0x50] sm:$0xff]  ;;  %v135_v7 = vld [vmem:[%s4536_s2 + $0x48] sm:$0xff]  ;;  %v134_v8 = vld [vmem:[%s4536_s2 + $0x40] sm:$0xff] }
  0x29   :  { %2629 = vmatprep.subr.mxu0 %v140_v1  ;;  %3188 = vmatprep.subr.mxu1 %v140_v1  ;;  %v133_v9 = vld [vmem:[%s4536_s2 + $0x38] sm:$0xff]  ;;  %v132_v10 = vld [vmem:[%s4536_s2 + $0x30] sm:$0xff]  ;;  %v131_v11 = vld [vmem:[%s4536_s2 + $0x28] sm:$0xff] }
  0x2a   :  { %2630 = vmatpush3.msra.mxu0 %v140_v1  ;;  %3204 = vmatpush3.msra.mxu1 %v140_v1  ;;  %v130_v12 = vld [vmem:[%s4536_s2 + $0x20] sm:$0xff]  ;;  %v129_v13 = vld [vmem:[%s4536_s2 + $0x18] sm:$0xff]  ;;  %v128_v14 = vld [vmem:[%s4536_s2 + $0x10] sm:$0xff] }
  0x2b   :  { %2631 = vmatprep.subr.mxu0 %v139_v2  ;;  %3189 = vmatprep.subr.mxu1 %v139_v2  ;;  %v127_v15 = vld [vmem:[%s4536_s2 + $0x8] sm:$0xff]  ;;  %v126_v16 = vld [vmem:[%s4536_s2] sm:$0xff]  ;;  %v421_v21 = vld [vmem:[%s4538_s4 + $0x78] sm:$0xff] }
  0x2c   :  { %v94_v4 = vld [vmem:[%s4553_s30] sm:$0xff]  ;;  %2632 = vmatpush3.msra.mxu0 %v139_v2  ;;  %3205 = vmatpush3.msra.mxu1 %v139_v2  ;;  %v95_v17 = vld [vmem:[%s4553_s30 + $0x8] sm:$0xff]  ;;  %v96_v18 = vld [vmem:[%s4553_s30 + $0x10] sm:$0xff] }
  0x2d   :  { %2659 = vmatprep.mubr.f32.mxu0 %v94_v4  ;;  %2633 = vmatprep.subr.mxu0 %v138_v3  ;;  %v110_v19 = vld [vmem:[%s4553_s30 + $0x80] sm:$0xff]  ;;  %v111_v20 = vld [vmem:[%s4553_s30 + $0x88] sm:$0xff]  ;;  %v112_v22 = vld [vmem:[%s4553_s30 + $0x90] sm:$0xff] }
  0x2e   :  { %2634 = vmatpush3.msra.mxu0 %v138_v3  ;;  %3190 = vmatprep.subr.mxu1 %v138_v3  ;;  %v97_v23 = vld [vmem:[%s4553_s30 + $0x18] sm:$0xff]  ;;  %v420_v24 = vld [vmem:[%s4538_s4 + $0x70] sm:$0xff]  ;;  %v98_v25 = vld [vmem:[%s4553_s30 + $0x20] sm:$0xff] }
  0x2f   :  { %2635 = vmatprep.subr.mxu0 %v137_v5  ;;  %3206 = vmatpush3.msra.mxu1 %v138_v3  ;;  %v113_v26 = vld [vmem:[%s4553_s30 + $0x98] sm:$0xff]  ;;  %v419_v27 = vld [vmem:[%s4538_s4 + $0x68] sm:$0xff]  ;;  %v114_v28 = vld [vmem:[%s4553_s30 + $0xa0] sm:$0xff] }
  0x30   :  { %2636 = vmatpush3.msra.mxu0 %v137_v5  ;;  %3191 = vmatprep.subr.mxu1 %v137_v5  ;;  %v99_v29 = vld [vmem:[%s4553_s30 + $0x28] sm:$0xff]  ;;  %v418_v30 = vld [vmem:[%s4538_s4 + $0x60] sm:$0xff]  ;;  %v100_v31 = vld [vmem:[%s4553_s30 + $0x30] sm:$0xff] }
  0x31   :  { %2637 = vmatprep.subr.mxu0 %v136_v6  ;;  %3207 = vmatpush3.msra.mxu1 %v137_v5  ;;  %v115_v32 = vld [vmem:[%s4553_s30 + $0xa8] sm:$0xff]  ;;  %v417_v33 = vld [vmem:[%s4538_s4 + $0x58] sm:$0xff]  ;;  %v116_v34 = vld [vmem:[%s4553_s30 + $0xb0] sm:$0xff] }
  0x32   :  { %2638 = vmatpush3.msra.mxu0 %v136_v6  ;;  %3192 = vmatprep.subr.mxu1 %v136_v6  ;;  %v101_v35 = vld [vmem:[%s4553_s30 + $0x38] sm:$0xff]  ;;  %v416_v36 = vld [vmem:[%s4538_s4 + $0x50] sm:$0xff]  ;;  %v102_v37 = vld [vmem:[%s4553_s30 + $0x40] sm:$0xff] }
  0x33   :  { %2639 = vmatprep.subr.mxu0 %v135_v7  ;;  %3208 = vmatpush3.msra.mxu1 %v136_v6  ;;  %v117_v38 = vld [vmem:[%s4553_s30 + $0xb8] sm:$0xff]  ;;  %v415_v39 = vld [vmem:[%s4538_s4 + $0x48] sm:$0xff]  ;;  %v118_v40 = vld [vmem:[%s4553_s30 + $0xc0] sm:$0xff] }
  0x34   :  { %2640 = vmatpush3.msra.mxu0 %v135_v7  ;;  %3193 = vmatprep.subr.mxu1 %v135_v7  ;;  %v103_v41 = vld [vmem:[%s4553_s30 + $0x48] sm:$0xff]  ;;  %v414_v42 = vld [vmem:[%s4538_s4 + $0x40] sm:$0xff]  ;;  %v104_v43 = vld [vmem:[%s4553_s30 + $0x50] sm:$0xff] }
  0x35   :  { %2641 = vmatprep.subr.mxu0 %v134_v8  ;;  %3209 = vmatpush3.msra.mxu1 %v135_v7  ;;  %v119_v44 = vld [vmem:[%s4553_s30 + $0xc8] sm:$0xff]  ;;  %v413_v45 = vld [vmem:[%s4538_s4 + $0x38] sm:$0xff]  ;;  %v120_v46 = vld [vmem:[%s4553_s30 + $0xd0] sm:$0xff] }
  0x36   :  { %2642 = vmatpush3.msra.mxu0 %v134_v8  ;;  %3194 = vmatprep.subr.mxu1 %v134_v8  ;;  %v105_v47 = vld [vmem:[%s4553_s30 + $0x58] sm:$0xff]  ;;  %v412_v48 = vld [vmem:[%s4538_s4 + $0x30] sm:$0xff]  ;;  %v106_v49 = vld [vmem:[%s4553_s30 + $0x60] sm:$0xff] }
  0x37   :  { %2643 = vmatprep.subr.mxu0 %v133_v9  ;;  %3210 = vmatpush3.msra.mxu1 %v134_v8  ;;  %v121_v50 = vld [vmem:[%s4553_s30 + $0xd8] sm:$0xff]  ;;  %v411_v51 = vld [vmem:[%s4538_s4 + $0x28] sm:$0xff]  ;;  %v122_v52 = vld [vmem:[%s4553_s30 + $0xe0] sm:$0xff] }
  0x38   :  { %2644 = vmatpush3.msra.mxu0 %v133_v9  ;;  %3195 = vmatprep.subr.mxu1 %v133_v9  ;;  %v107_v53 = vld [vmem:[%s4553_s30 + $0x68] sm:$0xff]  ;;  %v410_v54 = vld [vmem:[%s4538_s4 + $0x20] sm:$0xff]  ;;  %v108_v55 = vld [vmem:[%s4553_s30 + $0x70] sm:$0xff] }
  0x39   :  { %2645 = vmatprep.subr.mxu0 %v132_v10  ;;  %3211 = vmatpush3.msra.mxu1 %v133_v9  ;;  %v123_v56 = vld [vmem:[%s4553_s30 + $0xe8] sm:$0xff]  ;;  %v409_v57 = vld [vmem:[%s4538_s4 + $0x18] sm:$0xff]  ;;  %v124_v58 = vld [vmem:[%s4553_s30 + $0xf0] sm:$0xff] }
  0x3a   :  { %2646 = vmatpush3.msra.mxu0 %v132_v10  ;;  %3196 = vmatprep.subr.mxu1 %v132_v10  ;;  %v109_v59 = vld [vmem:[%s4553_s30 + $0x78] sm:$0xff]  ;;  %v408_v61 = vld [vmem:[%s4538_s4 + $0x10] sm:$0xff]  ;;  %v407_v62 = vld [vmem:[%s4538_s4 + $0x8] sm:$0xff] }
  0x3b   :  { %2647 = vmatprep.subr.mxu0 %v131_v11  ;;  %3212 = vmatpush3.msra.mxu1 %v132_v10  ;;  %v125_v60 = vld [vmem:[%s4553_s30 + $0xf8] sm:$0xff]  ;;  %v406_v63 = vld [vmem:[%s4538_s4] sm:$0xff]  ;;  %v700_v2 = vld [vmem:[%s4540_s6 + $0x70] sm:$0xff] }
  0x3c   :  { %2648 = vmatpush3.msra.mxu0 %v131_v11  ;;  %3197 = vmatprep.subr.mxu1 %v131_v11  ;;  %v949_v0 = vld [vmem:[%s4542_s8 + $0x78] sm:$0xff]  ;;  %v699_v3 = vld [vmem:[%s4540_s6 + $0x68] sm:$0xff]  ;;  %v698_v4 = vld [vmem:[%s4540_s6 + $0x60] sm:$0xff] }
  0x3d   :  { %2649 = vmatprep.subr.mxu0 %v130_v12  ;;  %3213 = vmatpush3.msra.mxu1 %v131_v11  ;;  %v701_v1 = vld [vmem:[%s4540_s6 + $0x78] sm:$0xff]  ;;  %v696_v6 = vld [vmem:[%s4540_s6 + $0x50] sm:$0xff]  ;;  %v695_v7 = vld [vmem:[%s4540_s6 + $0x48] sm:$0xff] }
  0x3e   :  { %2650 = vmatpush3.msra.mxu0 %v130_v12  ;;  %3198 = vmatprep.subr.mxu1 %v130_v12  ;;  %v697_v5 = vld [vmem:[%s4540_s6 + $0x58] sm:$0xff]  ;;  %v694_v8 = vld [vmem:[%s4540_s6 + $0x40] sm:$0xff]  ;;  %v692_v10 = vld [vmem:[%s4540_s6 + $0x30] sm:$0xff] }
  0x3f   :  { %2651 = vmatprep.subr.mxu0 %v129_v13  ;;  %3214 = vmatpush3.msra.mxu1 %v130_v12  ;;  %v693_v9 = vld [vmem:[%s4540_s6 + $0x38] sm:$0xff]  ;;  %v691_v11 = vld [vmem:[%s4540_s6 + $0x28] sm:$0xff]  ;;  %v690_v12 = vld [vmem:[%s4540_s6 + $0x20] sm:$0xff] }
  0x40   :  { %2652 = vmatpush3.msra.mxu0 %v129_v13  ;;  %3199 = vmatprep.subr.mxu1 %v129_v13 }
  0x41   :  { %2653 = vmatprep.subr.mxu0 %v128_v14  ;;  %3215 = vmatpush3.msra.mxu1 %v129_v13  ;;  %v3685_v13 = vld [vmem:[%s4537_s3] ss:$0 sm:$0xff] }
  0x42   :  { %2654 = vmatpush3.msra.mxu0 %v128_v14  ;;  %3200 = vmatprep.subr.mxu1 %v128_v14 }
  0x43   :  { %2655 = vmatprep.subr.mxu0 %v127_v15  ;;  %3216 = vmatpush3.msra.mxu1 %v128_v14 }
  0x44   :  { %2656 = vmatpush3.msra.mxu0 %v127_v15  ;;  %3201 = vmatprep.subr.mxu1 %v127_v15 }
  0x45   :  { %2657 = vmatprep.subr.mxu0 %v126_v16  ;;  %3217 = vmatpush3.msra.mxu1 %v127_v15 }
  0x46   :  { %2658 = vmatpush3.msra.mxu0 %v126_v16  ;;  %3202 = vmatprep.subr.mxu1 %v126_v16 }
  0x47   :  { %2660 = vmatmul.mubr.f32.vlgmr.msra.gmra.mxu0 %v95_v17  ;;  %3218 = vmatpush3.msra.mxu1 %v126_v16 }
  0x48   :  { %2662 = vmatprep.mubr.f32.mxu0 %v96_v18  ;;  %2683 = vmatprep.mubr.f32.mxu1 %v110_v19 }
  0x49   :  { %2684 = vmatmul.mubr.f32.vlgmr.msra.gmra.mxu1 %v111_v20  ;;  %2707 = vmatprep.subr.mxu1 %v421_v21 }
  0x4a   :  { %2686 = vmatprep.mubr.f32.mxu1 %v112_v22  ;;  %2708 = vmatpush3.msra.mxu1 %v421_v21 }
  0x4b   :  { %2663 = vmatmul.mubr.f32.gmra.mxu0 %v97_v23  ;;  %2709 = vmatprep.subr.mxu1 %v420_v24 }
  0x4c   :  { %2665 = vmatprep.mubr.f32.mxu0 %v98_v25  ;;  %2710 = vmatpush3.msra.mxu1 %v420_v24 }
  0x4d   :  { %2687 = vmatmul.mubr.f32.gmra.mxu1 %v113_v26  ;;  %2711 = vmatprep.subr.mxu1 %v419_v27 }
  0x4e   :  { %2689 = vmatprep.mubr.f32.mxu1 %v114_v28  ;;  %2712 = vmatpush3.msra.mxu1 %v419_v27  ;;  %v948_v27 = vld [vmem:[%s4542_s8 + $0x70] sm:$0xff] }
  0x4f   :  { %2666 = vmatmul.mubr.f32.gmra.mxu0 %v99_v29  ;;  %2713 = vmatprep.subr.mxu1 %v418_v30 }
  0x50   :  { %2668 = vmatprep.mubr.f32.mxu0 %v100_v31  ;;  %2714 = vmatpush3.msra.mxu1 %v418_v30  ;;  %v947_v31 = vld [vmem:[%s4542_s8 + $0x68] sm:$0xff] }
  0x51   :  { %2690 = vmatmul.mubr.f32.gmra.mxu1 %v115_v32  ;;  %2715 = vmatprep.subr.mxu1 %v417_v33 }
  0x52   :  { %2692 = vmatprep.mubr.f32.mxu1 %v116_v34  ;;  %2716 = vmatpush3.msra.mxu1 %v417_v33 }
  0x53   :  { %2669 = vmatmul.mubr.f32.gmra.mxu0 %v101_v35  ;;  %2717 = vmatprep.subr.mxu1 %v416_v36 }
  0x54   :  { %2671 = vmatprep.mubr.f32.mxu0 %v102_v37  ;;  %2718 = vmatpush3.msra.mxu1 %v416_v36  ;;  %v946_v37 = vld [vmem:[%s4542_s8 + $0x60] sm:$0xff] }
  0x55   :  { %2693 = vmatmul.mubr.f32.gmra.mxu1 %v117_v38  ;;  %2719 = vmatprep.subr.mxu1 %v415_v39 }
  0x56   :  { %2695 = vmatprep.mubr.f32.mxu1 %v118_v40  ;;  %2720 = vmatpush3.msra.mxu1 %v415_v39  ;;  %v945_v40 = vld [vmem:[%s4542_s8 + $0x58] sm:$0xff] }
  0x57   :  { %2672 = vmatmul.mubr.f32.gmra.mxu0 %v103_v41  ;;  %2721 = vmatprep.subr.mxu1 %v414_v42 }
  0x58   :  { %2674 = vmatprep.mubr.f32.mxu0 %v104_v43  ;;  %2722 = vmatpush3.msra.mxu1 %v414_v42 }
  0x59   :  { %2696 = vmatmul.mubr.f32.gmra.mxu1 %v119_v44  ;;  %2723 = vmatprep.subr.mxu1 %v413_v45 }
  0x5a   :  { %2698 = vmatprep.mubr.f32.mxu1 %v120_v46  ;;  %2724 = vmatpush3.msra.mxu1 %v413_v45  ;;  %v944_v46 = vld [vmem:[%s4542_s8 + $0x50] sm:$0xff] }
  0x5b   :  { %2675 = vmatmul.mubr.f32.gmra.mxu0 %v105_v47  ;;  %2725 = vmatprep.subr.mxu1 %v412_v48 }
  0x5c   :  { %2677 = vmatprep.mubr.f32.mxu0 %v106_v49  ;;  %2726 = vmatpush3.msra.mxu1 %v412_v48  ;;  %v943_v49 = vld [vmem:[%s4542_s8 + $0x48] sm:$0xff] }
  0x5d   :  { %2699 = vmatmul.mubr.f32.gmra.mxu1 %v121_v50  ;;  %2727 = vmatprep.subr.mxu1 %v411_v51 }
  0x5e   :  { %2701 = vmatprep.mubr.f32.mxu1 %v122_v52  ;;  %2728 = vmatpush3.msra.mxu1 %v411_v51 }
  0x5f   :  { %2678 = vmatmul.mubr.f32.gmra.mxu0 %v107_v53  ;;  %2729 = vmatprep.subr.mxu1 %v410_v54 }
  0x60   :  { %2680 = vmatprep.mubr.f32.mxu0 %v108_v55  ;;  %2730 = vmatpush3.msra.mxu1 %v410_v54  ;;  %v942_v55 = vld [vmem:[%s4542_s8 + $0x40] sm:$0xff] }
  0x61   :  { %2702 = vmatmul.mubr.f32.gmra.mxu1 %v123_v56  ;;  %2731 = vmatprep.subr.mxu1 %v409_v57 }
  0x62   :  { %2704 = vmatprep.mubr.f32.mxu1 %v124_v58  ;;  %2732 = vmatpush3.msra.mxu1 %v409_v57  ;;  %v941_v58 = vld [vmem:[%s4542_s8 + $0x38] sm:$0xff] }
  0x63   :  { %2681 = vmatmul.mubr.f32.gmra.mxu0 %v109_v59  ;;  %2733 = vmatprep.subr.mxu1 %v408_v61 }
  0x64   :  { %2734 = vmatpush3.msra.mxu1 %v408_v61  ;;  %2787 = vmatprep.subr.mxu0 %v701_v1 }
  0x65   :  { %2705 = vmatmul.mubr.f32.gmra.mxu1 %v125_v60  ;;  %2735 = vmatprep.subr.mxu1 %v407_v62 }
  0x66   :  { %2736 = vmatpush3.msra.mxu1 %v407_v62  ;;  %2788 = vmatpush3.msra.mxu0 %v701_v1 }
  0x67   :  { %2737 = vmatprep.subr.mxu1 %v406_v63  ;;  %2789 = vmatprep.subr.mxu0 %v700_v2 }
  0x68   :  { %2738 = vmatpush3.msra.mxu1 %v406_v63  ;;  %2790 = vmatpush3.msra.mxu0 %v700_v2 }
  0x69   :  { %2867 = vmatprep.subr.mxu1 %v949_v0  ;;  %2791 = vmatprep.subr.mxu0 %v699_v3 }
  0x6a   :  { %2792 = vmatpush3.msra.mxu0 %v699_v3  ;;  %v939_v3 = vld [vmem:[%s4542_s8 + $0x28] sm:$0xff] }
  0x6b   :  { %2793 = vmatprep.subr.mxu0 %v698_v4 }
  0x6c   :  { %2794 = vmatpush3.msra.mxu0 %v698_v4 }
  0x6d   :  { %2795 = vmatprep.subr.mxu0 %v697_v5 }
  0x6e   :  { %2796 = vmatpush3.msra.mxu0 %v697_v5 }
  0x6f   :  { %2797 = vmatprep.subr.mxu0 %v696_v6 }
  0x70   :  { %2798 = vmatpush3.msra.mxu0 %v696_v6 }
  0x71   :  { %2799 = vmatprep.subr.mxu0 %v695_v7 }
  0x72   :  { %2800 = vmatpush3.msra.mxu0 %v695_v7 }
  0x73   :  { %2801 = vmatprep.subr.mxu0 %v694_v8 }
  0x74   :  { %2802 = vmatpush3.msra.mxu0 %v694_v8 }
  0x75   :  { %2803 = vmatprep.subr.mxu0 %v693_v9 }
  0x76   :  { %2804 = vmatpush3.msra.mxu0 %v693_v9  ;;  %v938_v9 = vld [vmem:[%s4542_s8 + $0x20] sm:$0xff] }
  0x77   :  { %2805 = vmatprep.subr.mxu0 %v692_v10 }
  0x78   :  { %2806 = vmatpush3.msra.mxu0 %v692_v10 }
  0x79   :  { %2807 = vmatprep.subr.mxu0 %v691_v11 }
  0x7a   :  { %2808 = vmatpush3.msra.mxu0 %v691_v11 }
  0x7b   :  { %2809 = vmatprep.subr.mxu0 %v690_v12 }
  0x7c   :  { %2810 = vmatpush3.msra.mxu0 %v690_v12 }
 0x107   :  { %v2661_v14 = vpop.f32.mrf.mxu0 }
 0x108   :  { %v221_v15 = vadd.f32 %v2661_v14, %v3685_v13  ;;  %v937_v14 = vld [vmem:[%s4542_s8 + $0x18] sm:$0xff] }
 0x109   :  { %v215_v16 = vpop.f32.mrf.mxu0  ;;  %v3688_v17 = vpop.f32.mrf.mxu1 }
 0x10a   :  { %v216_v18 = vadd.f32 %v3685_v13, %v215_v16  ;;  %v375_v22 = vmax.f32 %v221_v15, 0.0 }
 0x10b   :  { %v2664_v19 = vpop.f32.mrf.mxu0  ;;  %v3691_v20 = vpop.f32.mrf.mxu1 }
 0x10c   :  { %v374_v21 = vmax.f32 %v216_v18, 0.0  ;;  %v231_v23 = vadd.f32 %v2664_v19, %v3685_v13  ;;  %v296_v12 = vadd.f32 %v3685_v13, %v3691_v20 }
 0x10d   :  { %v225_v24 = vpop.f32.mrf.mxu0  ;;  %v3694_v25 = vpop.f32.mrf.mxu1 }
 0x10e   :  { %v226_v26 = vadd.f32 %v3685_v13, %v225_v24  ;;  %2739 = vmatprep.mubr.f32.mxu1 %v374_v21  ;;  %v377_v32 = vmax.f32 %v231_v23, 0.0  ;;  %v390_v23 = vmax.f32 %v296_v12, 0.0 }
 0x10f   :  { %v2667_v28 = vpop.f32.mrf.mxu0  ;;  %2740 = vmatmul.mubr.f32.vlgmr.msra.gmra.mxu1 %v375_v22  ;;  %v3700_v29 = vpop.f32.mrf.mxu1  ;;  %v936_v22 = vld [vmem:[%s4542_s8 + $0x10] sm:$0xff] }
 0x110   :  { %v376_v30 = vmax.f32 %v226_v26, 0.0  ;;  %2868 = vmatpush3.msra.mxu1 %v949_v0  ;;  %v241_v33 = vadd.f32 %v2667_v28, %v3685_v13  ;;  %v940_v0 = vld [vmem:[%s4542_s8 + $0x30] sm:$0xff]  ;;  %v306_v24 = vadd.f32 %v3685_v13, %v3700_v29  ;;  %v935_v26 = vld [vmem:[%s4542_s8 + $0x8] sm:$0xff]  ;;  %v301_v28 = vadd.f32 %v3688_v17, %v3685_v13 }
 0x111   :  { %v235_v34 = vpop.f32.mrf.mxu0  ;;  %v3706_v35 = vpop.f32.mrf.mxu1  ;;  %2869 = vmatprep.subr.mxu1 %v948_v27 }
 0x112   :  { %v236_v36 = vadd.f32 %v3685_v13, %v235_v34  ;;  %2742 = vmatprep.mubr.f32.mxu1 %v376_v30  ;;  %2870 = vmatpush3.msra.mxu1 %v948_v27  ;;  %v379_v41 = vmax.f32 %v241_v33, 0.0  ;;  %v311_v33 = vadd.f32 %v3694_v25, %v3685_v13 }
 0x113   :  { %v2670_v38 = vpop.f32.mrf.mxu0  ;;  %2743 = vmatmul.mubr.f32.gmra.mxu1 %v377_v32  ;;  %2871 = vmatprep.subr.mxu1 %v947_v31  ;;  %v3716_v44 = vpop.f32.mrf.mxu1  ;;  %v391_v32 = vmax.f32 %v301_v28, 0.0 }
 0x114   :  { %v378_v39 = vmax.f32 %v236_v36, 0.0  ;;  %2872 = vmatpush3.msra.mxu1 %v947_v31  ;;  %v251_v42 = vadd.f32 %v2670_v38, %v3685_v13  ;;  %v392_v31 = vmax.f32 %v306_v24, 0.0  ;;  %v316_v29 = vadd.f32 %v3685_v13, %v3716_v44 }
 0x115   :  { %v245_v43 = vpop.f32.mrf.mxu0  ;;  %2873 = vmatprep.subr.mxu1 %v946_v37  ;;  %v3726_v53 = vpop.f32.mrf.mxu1  ;;  %v321_v38 = vadd.f32 %v3706_v35, %v3685_v13 }
 0x116   :  { %v246_v45 = vadd.f32 %v3685_v13, %v245_v43  ;;  %2745 = vmatprep.mubr.f32.mxu1 %v378_v39  ;;  %2874 = vmatpush3.msra.mxu1 %v946_v37  ;;  %v381_v50 = vmax.f32 %v251_v42, 0.0  ;;  %v394_v36 = vmax.f32 %v316_v29, 0.0  ;;  %v393_v37 = vmax.f32 %v311_v33, 0.0 }
 0x117   :  { %v2673_v47 = vpop.f32.mrf.mxu0  ;;  %2746 = vmatmul.mubr.f32.gmra.mxu1 %v379_v41  ;;  %2875 = vmatprep.subr.mxu1 %v945_v40  ;;  %v325_v62 = vpop.f32.mrf.mxu1  ;;  %v395_v42 = vmax.f32 %v321_v38, 0.0  ;;  %v331_v25 = vadd.f32 %v3726_v53, %v3685_v13 }
 0x118   :  { %v380_v48 = vmax.f32 %v246_v45, 0.0  ;;  %2876 = vmatpush3.msra.mxu1 %v945_v40  ;;  %v261_v51 = vadd.f32 %v2673_v47, %v3685_v13  ;;  %v326_v17 = vadd.f32 %v3685_v13, %v325_v62  ;;  %v688_v62 = vld [vmem:[%s4540_s6 + $0x10] sm:$0xff] }
 0x119   :  { %v255_v52 = vpop.f32.mrf.mxu0  ;;  %2877 = vmatprep.subr.mxu1 %v944_v46  ;;  %v3744_v7 = vpop.f32.mrf.mxu1 }
 0x11a   :  { %v256_v54 = vadd.f32 %v3685_v13, %v255_v52  ;;  %2748 = vmatprep.mubr.f32.mxu1 %v380_v48  ;;  %2878 = vmatpush3.msra.mxu1 %v944_v46  ;;  %v383_v59 = vmax.f32 %v261_v51, 0.0  ;;  %v396_v40 = vmax.f32 %v326_v17, 0.0  ;;  %v397_v46 = vmax.f32 %v331_v25, 0.0 }
 0x11b   :  { %v2676_v56 = vpop.f32.mrf.mxu0  ;;  %2749 = vmatmul.mubr.f32.gmra.mxu1 %v381_v50  ;;  %2879 = vmatprep.subr.mxu1 %v943_v49  ;;  %v335_v19 = vpop.f32.mrf.mxu1  ;;  %v341_v35 = vadd.f32 %v3744_v7, %v3685_v13 }
 0x11c   :  { %v382_v57 = vmax.f32 %v256_v54, 0.0  ;;  %2880 = vmatpush3.msra.mxu1 %v943_v49  ;;  %v271_v60 = vadd.f32 %v2676_v56, %v3685_v13  ;;  %v336_v41 = vadd.f32 %v3685_v13, %v335_v19 }
 0x11d   :  { %v265_v61 = vpop.f32.mrf.mxu0  ;;  %2881 = vmatprep.subr.mxu1 %v942_v55  ;;  %v2700_v30 = vpop.f32.mrf.mxu1  ;;  %v399_v50 = vmax.f32 %v341_v35, 0.0 }
 0x11e   :  { %v266_v63 = vadd.f32 %v3685_v13, %v265_v61  ;;  %2751 = vmatprep.mubr.f32.mxu1 %v382_v57  ;;  %2882 = vmatpush3.msra.mxu1 %v942_v55  ;;  %v385_v4 = vmax.f32 %v271_v60, 0.0  ;;  %v398_v44 = vmax.f32 %v336_v41, 0.0  ;;  %v351_v51 = vadd.f32 %v2700_v30, %v3685_v13  ;;  %v689_v61 = vld [vmem:[%s4540_s6 + $0x18] sm:$0xff] }
 0x11f   :  { %v2679_v1 = vpop.f32.mrf.mxu0  ;;  %2752 = vmatmul.mubr.f32.gmra.mxu1 %v383_v59  ;;  %2883 = vmatprep.subr.mxu1 %v941_v58  ;;  %v345_v34 = vpop.f32.mrf.mxu1 }
 0x120   :  { %v384_v2 = vmax.f32 %v266_v63, 0.0  ;;  %2884 = vmatpush3.msra.mxu1 %v941_v58  ;;  %v281_v5 = vadd.f32 %v2679_v1, %v3685_v13  ;;  %v346_v45 = vadd.f32 %v3685_v13, %v345_v34  ;;  %v401_v55 = vmax.f32 %v351_v51, 0.0  ;;  %2811 = vmatprep.subr.mxu0 %v689_v61  ;;  %v934_v63 = vld [vmem:[%s4542_s8] sm:$0xff]  ;;  %v1389_v1 = vld [vmem:[#allocation2 + $0x78] sm:$0xff] }
 0x121   :  { %v275_v6 = vpop.f32.mrf.mxu0  ;;  %2885 = vmatprep.subr.mxu1 %v940_v0  ;;  %v2703_v39 = vpop.f32.mrf.mxu1  ;;  %2812 = vmatpush3.msra.mxu0 %v689_v61 }
 0x122   :  { %v276_v8 = vadd.f32 %v3685_v13, %v275_v6  ;;  %2754 = vmatprep.mubr.f32.mxu1 %v384_v2  ;;  %2886 = vmatpush3.msra.mxu1 %v940_v0  ;;  %v387_v15 = vmax.f32 %v281_v5, 0.0  ;;  %v400_v48 = vmax.f32 %v346_v45, 0.0  ;;  %v361_v56 = vadd.f32 %v2703_v39, %v3685_v13  ;;  %v686_v0 = vld [vmem:[%s4540_s6] sm:$0xff] }
 0x123   :  { %v2682_v10 = vpop.f32.mrf.mxu0  ;;  %2755 = vmatmul.mubr.f32.gmra.mxu1 %v385_v4  ;;  %2887 = vmatprep.subr.mxu1 %v939_v3  ;;  %v355_v43 = vpop.f32.mrf.mxu1  ;;  %v3803_v2 = vld [vmem:[%s4539_s5] ss:$0 sm:$0xff] }
 0x124   :  { %v386_v11 = vmax.f32 %v276_v8, 0.0  ;;  %2888 = vmatpush3.msra.mxu1 %v939_v3  ;;  %v291_v16 = vadd.f32 %v2682_v10, %v3685_v13  ;;  %v356_v49 = vadd.f32 %v3685_v13, %v355_v43  ;;  %v403_v58 = vmax.f32 %v361_v56, 0.0  ;;  %2813 = vmatprep.subr.mxu0 %v688_v62  ;;  %v1384_v43 = vld [vmem:[#allocation2 + $0x50] sm:$0xff]  ;;  %v1382_v56 = vld [vmem:[#allocation2 + $0x40] sm:$0xff] }
 0x125   :  { %v285_v18 = vpop.f32.mrf.mxu0  ;;  %2889 = vmatprep.subr.mxu1 %v938_v9  ;;  %v2706_v47 = vpop.f32.mrf.mxu1  ;;  %2814 = vmatpush3.msra.mxu0 %v688_v62 }
 0x126   :  { %v286_v21 = vadd.f32 %v3685_v13, %v285_v18  ;;  %2757 = vmatprep.mubr.f32.mxu1 %v386_v11  ;;  %2890 = vmatpush3.msra.mxu1 %v938_v9  ;;  %v389_v27 = vmax.f32 %v291_v16, 0.0  ;;  %v402_v53 = vmax.f32 %v356_v49, 0.0  ;;  %v371_v59 = vadd.f32 %v2706_v47, %v3685_v13  ;;  %v1383_v49 = vld [vmem:[#allocation2 + $0x48] sm:$0xff] }
 0x127   :  { %2758 = vmatmul.mubr.f32.gmra.mxu1 %v387_v15  ;;  %2891 = vmatprep.subr.mxu1 %v937_v14  ;;  %v365_v52 = vpop.f32.mrf.mxu1 }
 0x128   :  { %v388_v20 = vmax.f32 %v286_v21, 0.0  ;;  %2892 = vmatpush3.msra.mxu1 %v937_v14  ;;  %v366_v54 = vadd.f32 %v3685_v13, %v365_v52  ;;  %v405_v60 = vmax.f32 %v371_v59, 0.0  ;;  %v687_v13 = vld [vmem:[%s4540_s6 + $0x8] sm:$0xff]  ;;  %v1388_v14 = vld [vmem:[#allocation2 + $0x70] sm:$0xff] }
 0x129   :  { %2893 = vmatprep.subr.mxu1 %v936_v22  ;;  %2815 = vmatprep.subr.mxu0 %v687_v13 }
 0x12a   :  { %2760 = vmatprep.mubr.f32.mxu1 %v388_v20  ;;  %2894 = vmatpush3.msra.mxu1 %v936_v22  ;;  %v404_v57 = vmax.f32 %v366_v54, 0.0  ;;  %v1387_v20 = vld [vmem:[#allocation2 + $0x68] sm:$0xff] }
 0x12b   :  { %2761 = vmatmul.mubr.f32.gmra.mxu1 %v389_v27  ;;  %2895 = vmatprep.subr.mxu1 %v935_v26 }
 0x12c   :  { %2763 = vmatprep.mubr.f32.mxu1 %v390_v23  ;;  %2896 = vmatpush3.msra.mxu1 %v935_v26 }
 0x12d   :  { %2816 = vmatpush3.msra.mxu0 %v687_v13  ;;  %2897 = vmatprep.subr.mxu1 %v934_v63  ;;  %v1381_v13 = vld [vmem:[#allocation2 + $0x38] sm:$0xff] }
 0x12e   :  { %2817 = vmatprep.subr.mxu0 %v686_v0  ;;  %2898 = vmatpush3.msra.mxu1 %v934_v63 }
 0x12f   :  { %2764 = vmatmul.mubr.f32.gmra.mxu1 %v391_v32  ;;  %2818 = vmatpush3.msra.mxu0 %v686_v0 }
 0x130   :  { %2766 = vmatprep.mubr.f32.mxu1 %v392_v31  ;;  %2947 = vmatprep.subr.mxu0 %v1389_v1  ;;  %v1386_v31 = vld [vmem:[#allocation2 + $0x60] sm:$0xff] }
 0x133   :  { %2767 = vmatmul.mubr.f32.gmra.mxu1 %v393_v37  ;;  %v1385_v37 = vld [vmem:[#allocation2 + $0x58] sm:$0xff] }
 0x134   :  { %2769 = vmatprep.mubr.f32.mxu1 %v394_v36 }
 0x137   :  { %2770 = vmatmul.mubr.f32.gmra.mxu1 %v395_v42 }
 0x138   :  { %2772 = vmatprep.mubr.f32.mxu1 %v396_v40 }
 0x13b   :  { %2773 = vmatmul.mubr.f32.gmra.mxu1 %v397_v46 }
 0x13c   :  { %2775 = vmatprep.mubr.f32.mxu1 %v398_v44 }
 0x13f   :  { %2776 = vmatmul.mubr.f32.gmra.mxu1 %v399_v50 }
 0x140   :  { %2778 = vmatprep.mubr.f32.mxu1 %v400_v48 }
 0x143   :  { %2779 = vmatmul.mubr.f32.gmra.mxu1 %v401_v55 }
 0x144   :  { %2781 = vmatprep.mubr.f32.mxu1 %v402_v53 }
 0x147   :  { %2782 = vmatmul.mubr.f32.gmra.mxu1 %v403_v58 }
 0x148   :  { %2784 = vmatprep.mubr.f32.mxu1 %v404_v57 }
 0x14b   :  { %2785 = vmatmul.mubr.f32.gmra.mxu1 %v405_v60 }
 0x1cf   :  { %v2741_v3 = vpop.f32.mrf.mxu1 }
 0x1d0   :  { %v501_v4 = vadd.f32 %v2741_v3, %v3803_v2 }
 0x1d1   :  { %v495_v5 = vpop.f32.mrf.mxu1 }
 0x1d2   :  { %v496_v6 = vadd.f32 %v3803_v2, %v495_v5  ;;  %v655_v9 = vmax.f32 %v501_v4, 0.0 }
 0x1d3   :  { %v2744_v7 = vpop.f32.mrf.mxu1 }
 0x1d4   :  { %v654_v8 = vmax.f32 %v496_v6, 0.0  ;;  %v511_v10 = vadd.f32 %v2744_v7, %v3803_v2  ;;  %v1380_v6 = vld [vmem:[#allocation2 + $0x30] sm:$0xff] }
 0x1d5   :  { %v505_v11 = vpop.f32.mrf.mxu1 }
 0x1d6   :  { %v506_v12 = vadd.f32 %v3803_v2, %v505_v11  ;;  %2819 = vmatprep.mubr.f32.mxu0 %v654_v8  ;;  %2899 = vmatprep.mubr.f32.mxu1 %v654_v8  ;;  %v657_v18 = vmax.f32 %v511_v10, 0.0 }
 0x1d7   :  { %v2747_v15 = vpop.f32.mrf.mxu1  ;;  %2820 = vmatmul.mubr.f32.vlgmr.msra.gmra.mxu0 %v655_v9  ;;  %2900 = vmatmul.mubr.f32.vlgmr.msra.gmra.mxu1 %v655_v9 }
 0x1d8   :  { %v656_v16 = vmax.f32 %v506_v12, 0.0  ;;  %2948 = vmatpush3.msra.mxu0 %v1389_v1  ;;  %v521_v19 = vadd.f32 %v2747_v15, %v3803_v2 }
 0x1d9   :  { %v515_v21 = vpop.f32.mrf.mxu1  ;;  %2949 = vmatprep.subr.mxu0 %v1388_v14 }
 0x1da   :  { %v516_v22 = vadd.f32 %v3803_v2, %v515_v21  ;;  %2822 = vmatprep.mubr.f32.mxu0 %v656_v16  ;;  %2902 = vmatprep.mubr.f32.mxu1 %v656_v16  ;;  %v659_v26 = vmax.f32 %v521_v19, 0.0 }
 0x1db   :  { %v2750_v23 = vpop.f32.mrf.mxu1  ;;  %2823 = vmatmul.mubr.f32.gmra.mxu0 %v657_v18  ;;  %2903 = vmatmul.mubr.f32.gmra.mxu1 %v657_v18 }
 0x1dc   :  { %v658_v24 = vmax.f32 %v516_v22, 0.0  ;;  %2950 = vmatpush3.msra.mxu0 %v1388_v14  ;;  %v531_v27 = vadd.f32 %v2750_v23, %v3803_v2 }
 0x1dd   :  { %v525_v28 = vpop.f32.mrf.mxu1  ;;  %2951 = vmatprep.subr.mxu0 %v1387_v20 }
 0x1de   :  { %v526_v30 = vadd.f32 %v3803_v2, %v525_v28  ;;  %2825 = vmatprep.mubr.f32.mxu0 %v658_v24  ;;  %2905 = vmatprep.mubr.f32.mxu1 %v658_v24  ;;  %v661_v33 = vmax.f32 %v531_v27, 0.0 }
 0x1df   :  { %v2753_v29 = vpop.f32.mrf.mxu1  ;;  %2826 = vmatmul.mubr.f32.gmra.mxu0 %v659_v26  ;;  %2906 = vmatmul.mubr.f32.gmra.mxu1 %v659_v26 }
 0x1e0   :  { %v660_v32 = vmax.f32 %v526_v30, 0.0  ;;  %2952 = vmatpush3.msra.mxu0 %v1387_v20  ;;  %v541_v34 = vadd.f32 %v2753_v29, %v3803_v2 }
 0x1e1   :  { %v535_v36 = vpop.f32.mrf.mxu1  ;;  %2953 = vmatprep.subr.mxu0 %v1386_v31 }
 0x1e2   :  { %v536_v17 = vadd.f32 %v3803_v2, %v535_v36  ;;  %2828 = vmatprep.mubr.f32.mxu0 %v660_v32  ;;  %2908 = vmatprep.mubr.f32.mxu1 %v660_v32  ;;  %v663_v40 = vmax.f32 %v541_v34, 0.0 }
 0x1e3   :  { %v2756_v38 = vpop.f32.mrf.mxu1  ;;  %2829 = vmatmul.mubr.f32.gmra.mxu0 %v661_v33  ;;  %2909 = vmatmul.mubr.f32.gmra.mxu1 %v661_v33 }
 0x1e4   :  { %v662_v39 = vmax.f32 %v536_v17, 0.0  ;;  %2954 = vmatpush3.msra.mxu0 %v1386_v31  ;;  %v551_v41 = vadd.f32 %v2756_v38, %v3803_v2 }
 0x1e5   :  { %v545_v42 = vpop.f32.mrf.mxu1  ;;  %2955 = vmatprep.subr.mxu0 %v1385_v37 }
 0x1e6   :  { %v546_v25 = vadd.f32 %v3803_v2, %v545_v42  ;;  %2831 = vmatprep.mubr.f32.mxu0 %v662_v39  ;;  %2911 = vmatprep.mubr.f32.mxu1 %v662_v39  ;;  %v665_v46 = vmax.f32 %v551_v41, 0.0 }
 0x1e7   :  { %v2759_v44 = vpop.f32.mrf.mxu1  ;;  %2832 = vmatmul.mubr.f32.gmra.mxu0 %v663_v40  ;;  %2912 = vmatmul.mubr.f32.gmra.mxu1 %v663_v40 }
 0x1e8   :  { %v664_v45 = vmax.f32 %v546_v25, 0.0  ;;  %2956 = vmatpush3.msra.mxu0 %v1385_v37  ;;  %v561_v35 = vadd.f32 %v2759_v44, %v3803_v2 }
 0x1e9   :  { %v555_v47 = vpop.f32.mrf.mxu1  ;;  %2957 = vmatprep.subr.mxu0 %v1384_v43 }
 0x1ea   :  { %v556_v48 = vadd.f32 %v3803_v2, %v555_v47  ;;  %2834 = vmatprep.mubr.f32.mxu0 %v664_v45  ;;  %2914 = vmatprep.mubr.f32.mxu1 %v664_v45  ;;  %v667_v52 = vmax.f32 %v561_v35, 0.0  ;;  %v1379_v35 = vld [vmem:[#allocation2 + $0x28] sm:$0xff]  ;;  %v1378_v47 = vld [vmem:[#allocation2 + $0x20] sm:$0xff] }
 0x1eb   :  { %v2762_v50 = vpop.f32.mrf.mxu1  ;;  %2835 = vmatmul.mubr.f32.gmra.mxu0 %v665_v46  ;;  %2915 = vmatmul.mubr.f32.gmra.mxu1 %v665_v46 }
 0x1ec   :  { %v666_v51 = vmax.f32 %v556_v48, 0.0  ;;  %2958 = vmatpush3.msra.mxu0 %v1384_v43  ;;  %v571_v53 = vadd.f32 %v2762_v50, %v3803_v2  ;;  %v1377_v48 = vld [vmem:[#allocation2 + $0x18] sm:$0xff]  ;;  %v1374_v50 = vld [vmem:[#allocation2] sm:$0xff] }
 0x1ed   :  { %v565_v54 = vpop.f32.mrf.mxu1  ;;  %2959 = vmatprep.subr.mxu0 %v1383_v49 }
 0x1ee   :  { %v566_v55 = vadd.f32 %v3803_v2, %v565_v54  ;;  %2837 = vmatprep.mubr.f32.mxu0 %v666_v51  ;;  %2917 = vmatprep.mubr.f32.mxu1 %v666_v51  ;;  %v669_v59 = vmax.f32 %v571_v53, 0.0  ;;  %v1669_v51 = vld [vmem:[#allocation4 + $0x78] sm:$0xff]  ;;  %v1667_v53 = vld [vmem:[#allocation4 + $0x68] sm:$0xff]  ;;  %v1666_v54 = vld [vmem:[#allocation4 + $0x60] sm:$0xff] }
 0x1ef   :  { %v2765_v57 = vpop.f32.mrf.mxu1  ;;  %2838 = vmatmul.mubr.f32.gmra.mxu0 %v667_v52  ;;  %2918 = vmatmul.mubr.f32.gmra.mxu1 %v667_v52  ;;  %v1668_v52 = vld [vmem:[#allocation4 + $0x70] sm:$0xff] }
 0x1f0   :  { %v668_v58 = vmax.f32 %v566_v55, 0.0  ;;  %2960 = vmatpush3.msra.mxu0 %v1383_v49  ;;  %v581_v60 = vadd.f32 %v2765_v57, %v3803_v2  ;;  %v1375_v49 = vld [vmem:[#allocation2 + $0x8] sm:$0xff]  ;;  %3027 = vmatprep.subr.mxu1 %v1669_v51  ;;  %v1665_v55 = vld [vmem:[#allocation4 + $0x58] sm:$0xff] }
 0x1f1   :  { %v575_v61 = vpop.f32.mrf.mxu1  ;;  %2961 = vmatprep.subr.mxu0 %v1382_v56  ;;  %3028 = vmatpush3.msra.mxu1 %v1669_v51  ;;  %v1663_v57 = vld [vmem:[#allocation4 + $0x48] sm:$0xff] }
 0x1f2   :  { %v576_v62 = vadd.f32 %v3803_v2, %v575_v61  ;;  %2840 = vmatprep.mubr.f32.mxu0 %v668_v58  ;;  %2920 = vmatprep.mubr.f32.mxu1 %v668_v58  ;;  %v671_v1 = vmax.f32 %v581_v60, 0.0  ;;  %v1662_v58 = vld [vmem:[#allocation4 + $0x40] sm:$0xff]  ;;  %v1660_v60 = vld [vmem:[#allocation4 + $0x30] sm:$0xff]  ;;  %v1659_v61 = vld [vmem:[#allocation4 + $0x28] sm:$0xff] }
 0x1f3   :  { %v2768_v63 = vpop.f32.mrf.mxu1  ;;  %2841 = vmatmul.mubr.f32.gmra.mxu0 %v669_v59  ;;  %2921 = vmatmul.mubr.f32.gmra.mxu1 %v669_v59  ;;  %v1661_v59 = vld [vmem:[#allocation4 + $0x38] sm:$0xff] }
 0x1f4   :  { %v670_v0 = vmax.f32 %v576_v62, 0.0  ;;  %2962 = vmatpush3.msra.mxu0 %v1382_v56  ;;  %v591_v3 = vadd.f32 %v2768_v63, %v3803_v2  ;;  %3029 = vmatprep.subr.mxu1 %v1668_v52  ;;  %v1664_v56 = vld [vmem:[#allocation4 + $0x50] sm:$0xff]  ;;  %v1658_v62 = vld [vmem:[#allocation4 + $0x20] sm:$0xff] }
 0x1f5   :  { %v585_v4 = vpop.f32.mrf.mxu1  ;;  %2963 = vmatprep.subr.mxu0 %v1381_v13  ;;  %3030 = vmatpush3.msra.mxu1 %v1668_v52  ;;  %v1656_v63 = vld [vmem:[#allocation4 + $0x10] sm:$0xff] }
 0x1f6   :  { %v586_v5 = vadd.f32 %v3803_v2, %v585_v4  ;;  %2843 = vmatprep.mubr.f32.mxu0 %v670_v0  ;;  %2923 = vmatprep.mubr.f32.mxu1 %v670_v0  ;;  %v673_v9 = vmax.f32 %v591_v3, 0.0  ;;  %v1655_v0 = vld [vmem:[#allocation4 + $0x8] sm:$0xff]  ;;  %v3845_v3 = vld [vmem:[%s4543_s9] ss:$0 sm:$0xff] }
 0x1f7   :  { %v2771_v7 = vpop.f32.mrf.mxu1  ;;  %2844 = vmatmul.mubr.f32.gmra.mxu0 %v671_v1  ;;  %2924 = vmatmul.mubr.f32.gmra.mxu1 %v671_v1  ;;  %v3840_v1 = vld [vmem:[%s4541_s7] ss:$0 sm:$0xff] }
 0x1f8   :  { %v672_v8 = vmax.f32 %v586_v5, 0.0  ;;  %2964 = vmatpush3.msra.mxu0 %v1381_v13  ;;  %v601_v10 = vadd.f32 %v2771_v7, %v3803_v2  ;;  %3031 = vmatprep.subr.mxu1 %v1667_v53  ;;  %v1657_v13 = vld [vmem:[#allocation4 + $0x18] sm:$0xff] }
 0x1f9   :  { %v595_v11 = vpop.f32.mrf.mxu1  ;;  %2965 = vmatprep.subr.mxu0 %v1380_v6  ;;  %3032 = vmatpush3.msra.mxu1 %v1667_v53 }
 0x1fa   :  { %v596_v12 = vadd.f32 %v3803_v2, %v595_v11  ;;  %2846 = vmatprep.mubr.f32.mxu0 %v672_v8  ;;  %2926 = vmatprep.mubr.f32.mxu1 %v672_v8  ;;  %v675_v16 = vmax.f32 %v601_v10, 0.0 }
 0x1fb   :  { %v2774_v14 = vpop.f32.mrf.mxu1  ;;  %2847 = vmatmul.mubr.f32.gmra.mxu0 %v673_v9  ;;  %2927 = vmatmul.mubr.f32.gmra.mxu1 %v673_v9 }
 0x1fc   :  { %v674_v15 = vmax.f32 %v596_v12, 0.0  ;;  %2966 = vmatpush3.msra.mxu0 %v1380_v6  ;;  %v611_v18 = vadd.f32 %v2774_v14, %v3803_v2  ;;  %3033 = vmatprep.subr.mxu1 %v1666_v54 }
 0x1fd   :  { %v605_v19 = vpop.f32.mrf.mxu1  ;;  %2967 = vmatprep.subr.mxu0 %v1379_v35  ;;  %3034 = vmatpush3.msra.mxu1 %v1666_v54 }
 0x1fe   :  { %v606_v21 = vadd.f32 %v3803_v2, %v605_v19  ;;  %2849 = vmatprep.mubr.f32.mxu0 %v674_v15  ;;  %2929 = vmatprep.mubr.f32.mxu1 %v674_v15  ;;  %v677_v23 = vmax.f32 %v611_v18, 0.0 }
 0x1ff   :  { %v2777_v22 = vpop.f32.mrf.mxu1  ;;  %2850 = vmatmul.mubr.f32.gmra.mxu0 %v675_v16  ;;  %2930 = vmatmul.mubr.f32.gmra.mxu1 %v675_v16 }
 0x200   :  { %v676_v20 = vmax.f32 %v606_v21, 0.0  ;;  %v621_v24 = vadd.f32 %v2777_v22, %v3803_v2  ;;  %2968 = vmatpush3.msra.mxu0 %v1379_v35  ;;  %3035 = vmatprep.subr.mxu1 %v1665_v55 }
 0x201   :  { %v615_v26 = vpop.f32.mrf.mxu1  ;;  %2969 = vmatprep.subr.mxu0 %v1378_v47  ;;  %3036 = vmatpush3.msra.mxu1 %v1665_v55 }
 0x202   :  { %v616_v27 = vadd.f32 %v3803_v2, %v615_v26  ;;  %2852 = vmatprep.mubr.f32.mxu0 %v676_v20  ;;  %2932 = vmatprep.mubr.f32.mxu1 %v676_v20  ;;  %v679_v31 = vmax.f32 %v621_v24, 0.0 }
 0x203   :  { %v2780_v28 = vpop.f32.mrf.mxu1  ;;  %2853 = vmatmul.mubr.f32.gmra.mxu0 %v677_v23  ;;  %2933 = vmatmul.mubr.f32.gmra.mxu1 %v677_v23 }
 0x204   :  { %v678_v30 = vmax.f32 %v616_v27, 0.0  ;;  %v631_v29 = vadd.f32 %v2780_v28, %v3803_v2  ;;  %2970 = vmatpush3.msra.mxu0 %v1378_v47  ;;  %3037 = vmatprep.subr.mxu1 %v1664_v56 }
 0x205   :  { %v625_v32 = vpop.f32.mrf.mxu1  ;;  %2971 = vmatprep.subr.mxu0 %v1377_v48  ;;  %3038 = vmatpush3.msra.mxu1 %v1664_v56 }
 0x206   :  { %v626_v33 = vadd.f32 %v3803_v2, %v625_v32  ;;  %2855 = vmatprep.mubr.f32.mxu0 %v678_v30  ;;  %2935 = vmatprep.mubr.f32.mxu1 %v678_v30  ;;  %v681_v17 = vmax.f32 %v631_v29, 0.0 }
 0x207   :  { %v2783_v34 = vpop.f32.mrf.mxu1  ;;  %2856 = vmatmul.mubr.f32.gmra.mxu0 %v679_v31  ;;  %2936 = vmatmul.mubr.f32.gmra.mxu1 %v679_v31 }
 0x208   :  { %v680_v36 = vmax.f32 %v626_v33, 0.0  ;;  %v641_v37 = vadd.f32 %v2783_v34, %v3803_v2  ;;  %2972 = vmatpush3.msra.mxu0 %v1377_v48  ;;  %3039 = vmatprep.subr.mxu1 %v1663_v57 }
 0x209   :  { %v635_v38 = vpop.f32.mrf.mxu1  ;;  %3040 = vmatpush3.msra.mxu1 %v1663_v57 }
 0x20a   :  { %v636_v39 = vadd.f32 %v3803_v2, %v635_v38  ;;  %2858 = vmatprep.mubr.f32.mxu0 %v680_v36  ;;  %2938 = vmatprep.mubr.f32.mxu1 %v680_v36  ;;  %v683_v42 = vmax.f32 %v641_v37, 0.0 }
 0x20b   :  { %v2786_v40 = vpop.f32.mrf.mxu1  ;;  %2859 = vmatmul.mubr.f32.gmra.mxu0 %v681_v17  ;;  %2939 = vmatmul.mubr.f32.gmra.mxu1 %v681_v17 }
 0x20c   :  { %v682_v41 = vmax.f32 %v636_v39, 0.0  ;;  %v651_v25 = vadd.f32 %v2786_v40, %v3803_v2  ;;  %3041 = vmatprep.subr.mxu1 %v1662_v58 }
 0x20d   :  { %v645_v43 = vpop.f32.mrf.mxu1  ;;  %3042 = vmatpush3.msra.mxu1 %v1662_v58 }
 0x20e   :  { %v646_v44 = vadd.f32 %v3803_v2, %v645_v43  ;;  %2861 = vmatprep.mubr.f32.mxu0 %v682_v41  ;;  %2941 = vmatprep.mubr.f32.mxu1 %v682_v41  ;;  %v685_v46 = vmax.f32 %v651_v25, 0.0  ;;  %v1376_v2 = vld [vmem:[#allocation2 + $0x10] sm:$0xff] }
 0x20f   :  { %2862 = vmatmul.mubr.f32.gmra.mxu0 %v683_v42  ;;  %2942 = vmatmul.mubr.f32.gmra.mxu1 %v683_v42 }
 0x210   :  { %v684_v45 = vmax.f32 %v646_v44, 0.0  ;;  %2973 = vmatprep.subr.mxu0 %v1376_v2  ;;  %3043 = vmatprep.subr.mxu1 %v1661_v59 }
 0x211   :  { %2974 = vmatpush3.msra.mxu0 %v1376_v2  ;;  %3044 = vmatpush3.msra.mxu1 %v1661_v59 }
 0x212   :  { %2864 = vmatprep.mubr.f32.mxu0 %v684_v45  ;;  %2944 = vmatprep.mubr.f32.mxu1 %v684_v45 }
 0x213   :  { %2865 = vmatmul.mubr.f32.gmra.mxu0 %v685_v46  ;;  %2945 = vmatmul.mubr.f32.gmra.mxu1 %v685_v46 }
 0x214   :  { %2975 = vmatprep.subr.mxu0 %v1375_v49  ;;  %3045 = vmatprep.subr.mxu1 %v1660_v60 }
 0x215   :  { %2976 = vmatpush3.msra.mxu0 %v1375_v49  ;;  %3046 = vmatpush3.msra.mxu1 %v1660_v60  ;;  %v1279_v60 = vld [vmem:[%s4535_s1 + $0x8] sm:$0xff] }
 0x216   :  { %2977 = vmatprep.subr.mxu0 %v1374_v50  ;;  %3047 = vmatprep.subr.mxu1 %v1659_v61 }
 0x217   :  { %2978 = vmatpush3.msra.mxu0 %v1374_v50  ;;  %3048 = vmatpush3.msra.mxu1 %v1659_v61 }
 0x218   :  { %3049 = vmatprep.subr.mxu1 %v1658_v62 }
 0x219   :  { %3050 = vmatpush3.msra.mxu1 %v1658_v62 }
 0x21a   :  { %3051 = vmatprep.subr.mxu1 %v1657_v13 }
 0x21b   :  { %3052 = vmatpush3.msra.mxu1 %v1657_v13 }
 0x21c   :  { %3053 = vmatprep.subr.mxu1 %v1656_v63 }
 0x21d   :  { %3054 = vmatpush3.msra.mxu1 %v1656_v63 }
 0x21e   :  { %3055 = vmatprep.subr.mxu1 %v1655_v0 }
 0x21f   :  { %3056 = vmatpush3.msra.mxu1 %v1655_v0 }
 0x297   :  { %v2821_v4 = vpop.f32.mrf.mxu0  ;;  %v2901_v5 = vpop.f32.mrf.mxu1 }
 0x298   :  { %v3848_v6 = vadd.f32 %v2821_v4, %v3840_v1  ;;  %v1029_v7 = vadd.f32 %v2901_v5, %v3845_v3 }
 0x299   :  { %v775_v8 = vpop.f32.mrf.mxu0  ;;  %v1023_v9 = vpop.f32.mrf.mxu1 }
 0x29a   :  { %2215 = vst [vmem:[%s4550_s16 + $0x20] sm:$0xff] %v3848_v6  ;;  %v1183_v10 = vmul.f32 0.5, %v1029_v7  ;;  %2247 = vst [vmem:[%s4550_s16 + $0x28] sm:$0xff] %v1029_v7  ;;  %v3859_v11 = vadd.f32 %v3840_v1, %v775_v8  ;;  %v1024_v12 = vadd.f32 %v3845_v3, %v1023_v9  ;;  %v1278_v8 = vld [vmem:[%s4535_s1] sm:$0xff] }
 0x29b   :  { %v2824_v14 = vpop.f32.mrf.mxu0  ;;  %v2904_v15 = vpop.f32.mrf.mxu1 }
 0x29c   :  { %v1216_v16 = vmul.f32 1.442695, %v1183_v10  ;;  %2214 = vst [vmem:[%s4550_s16 + $0x8] sm:$0xff] %v3859_v11  ;;  %v1182_v18 = vmul.f32 0.5, %v1024_v12  ;;  %2246 = vst [vmem:[%s4550_s16 + $0x10] sm:$0xff] %v1024_v12  ;;  %v3870_v19 = vadd.f32 %v2824_v14, %v3840_v1  ;;  %v1039_v21 = vadd.f32 %v2904_v15, %v3845_v3 }
 0x29d   :  { %v785_v22 = vpop.f32.mrf.mxu0  ;;  %v1033_v20 = vpop.f32.mrf.mxu1 }
 0x29e   :  { %3224 = vpow2.f32 %v1216_v16  ;;  %v1214_v23 = vmul.f32 1.442695, %v1182_v18  ;;  %2217 = vst [vmem:[%s4550_s16 + $0x50] sm:$0xff] %v3870_v19  ;;  %v1185_v24 = vmul.f32 0.5, %v1039_v21  ;;  %2249 = vst [vmem:[%s4550_s16 + $0x58] sm:$0xff] %v1039_v21  ;;  %v3881_v26 = vadd.f32 %v3840_v1, %v785_v22  ;;  %v1281_v21 = vld [vmem:[%s4535_s1 + $0x18] sm:$0xff] }
 0x29f   :  { %v1034_v27 = vadd.f32 %v3845_v3, %v1033_v20  ;;  %v2827_v28 = vpop.f32.mrf.mxu0  ;;  %v2907_v30 = vpop.f32.mrf.mxu1 }
 0x2a0   :  { %3226 = vpow2.f32 %v1214_v23  ;;  %v1220_v31 = vmul.f32 1.442695, %v1185_v24  ;;  %2216 = vst [vmem:[%s4550_s16 + $0x38] sm:$0xff] %v3881_v26  ;;  %v3889_v29 = vadd.f32 %v2827_v28, %v3840_v1  ;;  %v1049_v32 = vadd.f32 %v2907_v30, %v3845_v3 }
 0x2a1   :  { %v1184_v33 = vmul.f32 0.5, %v1034_v27  ;;  %2248 = vst [vmem:[%s4550_s16 + $0x40] sm:$0xff] %v1034_v27  ;;  %v795_v34 = vpop.f32.mrf.mxu0  ;;  %v1043_v36 = vpop.f32.mrf.mxu1 }
 0x2a2   :  { %3228 = vpow2.f32 %v1220_v31  ;;  %2219 = vst [vmem:[%s4550_s16 + $0x80] sm:$0xff] %v3889_v29  ;;  %v1187_v17 = vmul.f32 0.5, %v1049_v32  ;;  %2251 = vst [vmem:[%s4550_s16 + $0x88] sm:$0xff] %v1049_v32  ;;  %v3903_v37 = vadd.f32 %v3840_v1, %v795_v34  ;;  %v1044_v38 = vadd.f32 %v3845_v3, %v1043_v36  ;;  %v1280_v32 = vld [vmem:[%s4535_s1 + $0x10] sm:$0xff] }
 0x2a3   :  { %v1218_v39 = vmul.f32 1.442695, %v1184_v33  ;;  %v2830_v40 = vpop.f32.mrf.mxu0  ;;  %v2910_v41 = vpop.f32.mrf.mxu1 }
 0x2a4   :  { %v1224_v42 = vmul.f32 1.442695, %v1187_v17  ;;  %2218 = vst [vmem:[%s4550_s16 + $0x68] sm:$0xff] %v3903_v37  ;;  %v1186_v25 = vmul.f32 0.5, %v1044_v38  ;;  %2250 = vst [vmem:[%s4550_s16 + $0x70] sm:$0xff] %v1044_v38  ;;  %v3914_v43 = vadd.f32 %v2830_v40, %v3840_v1  ;;  %v1059_v44 = vadd.f32 %v2910_v41, %v3845_v3 }
 0x2a5   :  { %3230 = vpow2.f32 %v1218_v39  ;;  %v805_v45 = vpop.f32.mrf.mxu0  ;;  %v1053_v46 = vpop.f32.mrf.mxu1 }
 0x2a6   :  { %3232 = vpow2.f32 %v1224_v42  ;;  %v1222_v35 = vmul.f32 1.442695, %v1186_v25  ;;  %2221 = vst [vmem:[%s4550_s16 + $0xb0] sm:$0xff] %v3914_v43  ;;  %v1189_v47 = vmul.f32 0.5, %v1059_v44  ;;  %2253 = vst [vmem:[%s4550_s16 + $0xb8] sm:$0xff] %v1059_v44  ;;  %v3925_v48 = vadd.f32 %v3840_v1, %v805_v45 }
 0x2a7   :  { %v1054_v2 = vadd.f32 %v3845_v3, %v1053_v46  ;;  %v2833_v49 = vpop.f32.mrf.mxu0  ;;  %v2913_v50 = vpop.f32.mrf.mxu1 }
 0x2a8   :  { %3234 = vpow2.f32 %v1222_v35  ;;  %v1228_v51 = vmul.f32 1.442695, %v1189_v47  ;;  %2220 = vst [vmem:[%s4550_s16 + $0x98] sm:$0xff] %v3925_v48  ;;  %v3933_v52 = vadd.f32 %v2833_v49, %v3840_v1  ;;  %v1069_v53 = vadd.f32 %v2913_v50, %v3845_v3 }
 0x2a9   :  { %v1188_v54 = vmul.f32 0.5, %v1054_v2  ;;  %2252 = vst [vmem:[%s4550_s16 + $0xa0] sm:$0xff] %v1054_v2  ;;  %v815_v55 = vpop.f32.mrf.mxu0  ;;  %v1063_v56 = vpop.f32.mrf.mxu1 }
 0x2aa   :  { %3236 = vpow2.f32 %v1228_v51  ;;  %2223 = vst [vmem:[%s4550_s16 + $0xe0] sm:$0xff] %v3933_v52  ;;  %v1191_v57 = vmul.f32 0.5, %v1069_v53  ;;  %2255 = vst [vmem:[%s4550_s16 + $0xe8] sm:$0xff] %v1069_v53  ;;  %v3947_v58 = vadd.f32 %v3840_v1, %v815_v55  ;;  %v1064_v59 = vadd.f32 %v3845_v3, %v1063_v56  ;;  %v1282_v51 = vld [vmem:[%s4535_s1 + $0x20] sm:$0xff] }
 0x2ab   :  { %v3225_v61 = vpop.eup %3224  ;;  %v1226_v62 = vmul.f32 1.442695, %v1188_v54  ;;  %v2836_v13 = vpop.f32.mrf.mxu0 }
 0x2ac   :  { %v2916_v63 = vpop.f32.mrf.mxu1  ;;  %v1232_v0 = vmul.f32 1.442695, %v1191_v57  ;;  %2222 = vst [vmem:[%s4550_s16 + $0xc8] sm:$0xff] %v3947_v58  ;;  %v1190_v4 = vmul.f32 0.5, %v1064_v59  ;;  %2254 = vst [vmem:[%s4550_s16 + $0xd0] sm:$0xff] %v1064_v59  ;;  %v3961_v5 = vadd.f32 %v2836_v13, %v3840_v1  ;;  %v1311_v14 = vmul.f32 %v3225_v61, %v1279_v60 }
 0x2ad   :  { %v1079_v7 = vadd.f32 %v2916_v63, %v3845_v3  ;;  %v3227_v9 = vpop.eup %3226  ;;  %3238 = vpow2.f32 %v1226_v62  ;;  %v825_v10 = vpop.f32.mrf.mxu0 }
 0x2ae   :  { %v1073_v12 = vpop.f32.mrf.mxu1  ;;  %3240 = vpow2.f32 %v1232_v0  ;;  %v1230_v15 = vmul.f32 1.442695, %v1190_v4  ;;  %2225 = vst [vmem:[%s4550_s16 + $0x110] sm:$0xff] %v3961_v5  ;;  %v3975_v18 = vadd.f32 %v3840_v1, %v825_v10  ;;  %v1310_v27 = vmul.f32 %v3227_v9, %v1278_v8  ;;  %v1284_v10 = vld [vmem:[%s4535_s1 + $0x30] sm:$0xff] }
 0x2af   :  { %v1193_v16 = vmul.f32 0.5, %v1079_v7  ;;  %2257 = vst [vmem:[%s4550_s16 + $0x118] sm:$0xff] %v1079_v7  ;;  %v3229_v22 = vpop.eup %3228  ;;  %v1074_v20 = vadd.f32 %v3845_v3, %v1073_v12  ;;  %v2839_v23 = vpop.f32.mrf.mxu0  ;;  %v1343_v38 = vadd.f32 %v1311_v14, %v3848_v6  ;;  %v1283_v6 = vld [vmem:[%s4535_s1 + $0x28] sm:$0xff] }
 0x2b0   :  { %v2919_v24 = vpop.f32.mrf.mxu1  ;;  %3242 = vpow2.f32 %v1230_v15  ;;  %2224 = vst [vmem:[%s4550_s16 + $0xf8] sm:$0xff] %v3975_v18  ;;  %v3986_v30 = vadd.f32 %v2839_v23, %v3840_v1  ;;  %v1342_v17 = vadd.f32 %v1310_v27, %v3859_v11  ;;  %v1313_v39 = vmul.f32 %v3229_v22, %v1281_v21 }
 0x2b1   :  { %v1236_v28 = vmul.f32 1.442695, %v1193_v16  ;;  %v1089_v31 = vadd.f32 %v2919_v24, %v3845_v3  ;;  %v1192_v33 = vmul.f32 0.5, %v1074_v20  ;;  %2256 = vst [vmem:[%s4550_s16 + $0x100] sm:$0xff] %v1074_v20  ;;  %v835_v34 = vpop.f32.mrf.mxu0 }
 0x2b2   :  { %v1083_v36 = vpop.f32.mrf.mxu1  ;;  %v3231_v40 = vpop.eup %3230  ;;  %2227 = vst [vmem:[%s4550_s16 + $0x140] sm:$0xff] %v3986_v30  ;;  %v4005_v42 = vadd.f32 %v3840_v1, %v835_v34  ;;  %2979 = vmatprep.mubr.f32.mxu0 %v1342_v17  ;;  %v1345_v57 = vadd.f32 %v1313_v39, %v3870_v19  ;;  %v1285_v19 = vld [vmem:[%s4535_s1 + $0x38] sm:$0xff]  ;;  %v1286_v39 = vld [vmem:[%s4535_s1 + $0x40] sm:$0xff] }
 0x2b3   :  { %3244 = vpow2.f32 %v1236_v28  ;;  %v1195_v41 = vmul.f32 0.5, %v1089_v31  ;;  %2259 = vst [vmem:[%s4550_s16 + $0x148] sm:$0xff] %v1089_v31  ;;  %v1084_v11 = vadd.f32 %v3845_v3, %v1083_v36  ;;  %v3233_v25 = vpop.eup %3232  ;;  %v1234_v44 = vmul.f32 1.442695, %v1192_v33  ;;  %v2842_v45 = vpop.f32.mrf.mxu0  ;;  %2980 = vmatmul.mubr.f32.vlgmr.msra.gmra.mxu0 %v1343_v38 }
 0x2b4   :  { %v2922_v46 = vpop.f32.mrf.mxu1  ;;  %v1312_v35 = vmul.f32 %v3231_v40, %v1280_v32  ;;  %2226 = vst [vmem:[%s4550_s16 + $0x128] sm:$0xff] %v4005_v42  ;;  %v4019_v49 = vadd.f32 %v2842_v45, %v3840_v1  ;;  %v1315_v59 = vmul.f32 %v3233_v25, %v1283_v6 }
 0x2b5   :  { %v1240_v47 = vmul.f32 1.442695, %v1195_v41  ;;  %v1194_v2 = vmul.f32 0.5, %v1084_v11  ;;  %2258 = vst [vmem:[%s4550_s16 + $0x130] sm:$0xff] %v1084_v11  ;;  %v1099_v50 = vadd.f32 %v2922_v46, %v3845_v3  ;;  %v3235_v53 = vpop.eup %3234  ;;  %3246 = vpow2.f32 %v1234_v44  ;;  %v845_v54 = vpop.f32.mrf.mxu0 }
 0x2b6   :  { %v1093_v55 = vpop.f32.mrf.mxu1  ;;  %v1344_v56 = vadd.f32 %v1312_v35, %v3881_v26  ;;  %2229 = vst [vmem:[%s4550_s16 + $0x170] sm:$0xff] %v4019_v49  ;;  %v4035_v62 = vadd.f32 %v3840_v1, %v845_v54  ;;  %v1314_v4 = vmul.f32 %v3235_v53, %v1282_v51  ;;  %v1347_v21 = vadd.f32 %v1315_v59, %v3889_v29  ;;  %v1287_v29 = vld [vmem:[%s4535_s1 + $0x48] sm:$0xff] }
 0x2b7   :  { %3248 = vpow2.f32 %v1240_v47  ;;  %v1238_v60 = vmul.f32 1.442695, %v1194_v2  ;;  %v1197_v61 = vmul.f32 0.5, %v1099_v50  ;;  %2261 = vst [vmem:[%s4550_s16 + $0x178] sm:$0xff] %v1099_v50  ;;  %v3237_v26 = vpop.eup %3236  ;;  %v1094_v13 = vadd.f32 %v3845_v3, %v1093_v55  ;;  %v2845_v63 = vpop.f32.mrf.mxu0 }
 0x2b8   :  { %2982 = vmatprep.mubr.f32.mxu0 %v1344_v56  ;;  %v2925_v0 = vpop.f32.mrf.mxu1  ;;  %2228 = vst [vmem:[%s4550_s16 + $0x158] sm:$0xff] %v4035_v62  ;;  %v4046_v8 = vadd.f32 %v2845_v63, %v3840_v1  ;;  %v1346_v16 = vadd.f32 %v1314_v4, %v3903_v37  ;;  %v1317_v22 = vmul.f32 %v3237_v26, %v1285_v19  ;;  %v1288_v56 = vld [vmem:[%s4535_s1 + $0x50] sm:$0xff] }
 0x2b9   :  { %3250 = vpow2.f32 %v1238_v60  ;;  %v1244_v7 = vmul.f32 1.442695, %v1197_v61  ;;  %v1109_v9 = vadd.f32 %v2925_v0, %v3845_v3  ;;  %2983 = vmatmul.mubr.f32.gmra.mxu0 %v1345_v57  ;;  %v1196_v12 = vmul.f32 0.5, %v1094_v13  ;;  %2260 = vst [vmem:[%s4550_s16 + $0x160] sm:$0xff] %v1094_v13  ;;  %v855_v14 = vpop.f32.mrf.mxu0 }
 0x2ba   :  { %v1103_v15 = vpop.f32.mrf.mxu1  ;;  %v3239_v20 = vpop.eup %3238  ;;  %2231 = vst [vmem:[%s4550_s16 + $0x1a0] sm:$0xff] %v4046_v8  ;;  %v4065_v24 = vadd.f32 %v3840_v1, %v855_v14  ;;  %2985 = vmatprep.mubr.f32.mxu0 %v1346_v16  ;;  %v1349_v25 = vadd.f32 %v1317_v22, %v3914_v43  ;;  %v1289_v43 = vld [vmem:[%s4535_s1 + $0x58] sm:$0xff]  ;;  %v1290_v22 = vld [vmem:[%s4535_s1 + $0x60] sm:$0xff] }
 0x2bb   :  { %3252 = vpow2.f32 %v1244_v7  ;;  %v1199_v23 = vmul.f32 0.5, %v1109_v9  ;;  %2263 = vst [vmem:[%s4550_s16 + $0x1a8] sm:$0xff] %v1109_v9  ;;  %v1104_v37 = vadd.f32 %v3845_v3, %v1103_v15  ;;  %v3241_v27 = vpop.eup %3240  ;;  %v1242_v28 = vmul.f32 1.442695, %v1196_v12  ;;  %v2848_v31 = vpop.f32.mrf.mxu0 }
 0x2bc   :  { %v2928_v32 = vpop.f32.mrf.mxu1  ;;  %v1316_v33 = vmul.f32 %v3239_v20, %v1284_v10  ;;  %2230 = vst [vmem:[%s4550_s16 + $0x188] sm:$0xff] %v4065_v24  ;;  %v4079_v17 = vadd.f32 %v2848_v31, %v3840_v1  ;;  %v1319_v44 = vmul.f32 %v3241_v27, %v1287_v29 }
 0x2bd   :  { %v1248_v34 = vmul.f32 1.442695, %v1199_v23  ;;  %v1198_v36 = vmul.f32 0.5, %v1104_v37  ;;  %2262 = vst [vmem:[%s4550_s16 + $0x190] sm:$0xff] %v1104_v37  ;;  %v1119_v38 = vadd.f32 %v2928_v32, %v3845_v3  ;;  %2986 = vmatmul.mubr.f32.gmra.mxu0 %v1347_v21  ;;  %v3243_v40 = vpop.eup %3242  ;;  %3254 = vpow2.f32 %v1242_v28  ;;  %v865_v41 = vpop.f32.mrf.mxu0 }
 0x2be   :  { %v1113_v11 = vpop.f32.mrf.mxu1  ;;  %v1348_v6 = vadd.f32 %v1316_v33, %v3925_v48  ;;  %2233 = vst [vmem:[%s4550_s16 + $0x1d0] sm:$0xff] %v4079_v17  ;;  %v4095_v35 = vadd.f32 %v3840_v1, %v865_v41  ;;  %v1318_v51 = vmul.f32 %v3243_v40, %v1286_v39  ;;  %v1351_v19 = vadd.f32 %v1319_v44, %v3933_v52  ;;  %v1291_v52 = vld [vmem:[%s4535_s1 + $0x68] sm:$0xff] }
 0x2bf   :  { %3256 = vpow2.f32 %v1248_v34  ;;  %v1246_v45 = vmul.f32 1.442695, %v1198_v36  ;;  %v1201_v46 = vmul.f32 0.5, %v1119_v38  ;;  %2265 = vst [vmem:[%s4550_s16 + $0x1d8] sm:$0xff] %v1119_v38  ;;  %v1114_v47 = vadd.f32 %v3845_v3, %v1113_v11  ;;  %v2851_v2 = vpop.f32.mrf.mxu0 }
 0x2c0   :  { %v3245_v48 = vpop.eup %3244  ;;  %2988 = vmatprep.mubr.f32.mxu0 %v1348_v6  ;;  %v2931_v50 = vpop.f32.mrf.mxu1  ;;  %2232 = vst [vmem:[%s4550_s16 + $0x1b8] sm:$0xff] %v4095_v35  ;;  %v4106_v54 = vadd.f32 %v2851_v2, %v3840_v1  ;;  %v1350_v61 = vadd.f32 %v1318_v51, %v3947_v58  ;;  %v1292_v6 = vld [vmem:[%s4535_s1 + $0x70] sm:$0xff] }
 0x2c1   :  { %3258 = vpow2.f32 %v1246_v45  ;;  %v1252_v53 = vmul.f32 1.442695, %v1201_v46  ;;  %v1129_v55 = vadd.f32 %v2931_v50, %v3845_v3  ;;  %2989 = vmatmul.mubr.f32.gmra.mxu0 %v1349_v25  ;;  %v1200_v57 = vmul.f32 0.5, %v1114_v47  ;;  %2264 = vst [vmem:[%s4550_s16 + $0x1c0] sm:$0xff] %v1114_v47  ;;  %v875_v59 = vpop.f32.mrf.mxu0 }
 0x2c2   :  { %v1123_v60 = vpop.f32.mrf.mxu1  ;;  %v1321_v26 = vmul.f32 %v3245_v48, %v1289_v43  ;;  %v3247_v13 = vpop.eup %3246  ;;  %2235 = vst [vmem:[%s4550_s16 + $0x200] sm:$0xff] %v4106_v54  ;;  %v4125_v0 = vadd.f32 %v3840_v1, %v875_v59  ;;  %2991 = vmatprep.mubr.f32.mxu0 %v1350_v61 }
 0x2c3   :  { %3260 = vpow2.f32 %v1252_v53  ;;  %v1203_v63 = vmul.f32 0.5, %v1129_v55  ;;  %2267 = vst [vmem:[%s4550_s16 + $0x208] sm:$0xff] %v1129_v55  ;;  %v1124_v58 = vadd.f32 %v3845_v3, %v1123_v60  ;;  %v1250_v7 = vmul.f32 1.442695, %v1200_v57  ;;  %v2854_v9 = vpop.f32.mrf.mxu0 }
 0x2c4   :  { %v3249_v4 = vpop.eup %3248  ;;  %v2934_v10 = vpop.f32.mrf.mxu1  ;;  %v1320_v12 = vmul.f32 %v3247_v13, %v1288_v56  ;;  %2234 = vst [vmem:[%s4550_s16 + $0x1e8] sm:$0xff] %v4125_v0  ;;  %v4139_v16 = vadd.f32 %v2854_v9, %v3840_v1  ;;  %v1353_v27 = vadd.f32 %v1321_v26, %v3961_v5  ;;  %v1293_v5 = vld [vmem:[%s4535_s1 + $0x78] sm:$0xff]  ;;  %v1294_v26 = vld [vmem:[%s4535_s1 + $0x80] sm:$0xff] }
 0x2c5   :  { %v1256_v14 = vmul.f32 1.442695, %v1203_v63  ;;  %v1202_v15 = vmul.f32 0.5, %v1124_v58  ;;  %2266 = vst [vmem:[%s4550_s16 + $0x1f0] sm:$0xff] %v1124_v58  ;;  %v1139_v21 = vadd.f32 %v2934_v10, %v3845_v3  ;;  %2992 = vmatmul.mubr.f32.gmra.mxu0 %v1351_v19  ;;  %3262 = vpow2.f32 %v1250_v7  ;;  %v885_v23 = vpop.f32.mrf.mxu0 }
 0x2c6   :  { %v3251_v20 = vpop.eup %3250  ;;  %v1133_v37 = vpop.f32.mrf.mxu1  ;;  %v1352_v29 = vadd.f32 %v1320_v12, %v3975_v18  ;;  %v1323_v28 = vmul.f32 %v3249_v4, %v1291_v52  ;;  %2237 = vst [vmem:[%s4550_s16 + $0x230] sm:$0xff] %v4139_v16  ;;  %v4155_v33 = vadd.f32 %v3840_v1, %v885_v23 }
 0x2c7   :  { %3264 = vpow2.f32 %v1256_v14  ;;  %v1254_v31 = vmul.f32 1.442695, %v1202_v15  ;;  %v1205_v32 = vmul.f32 0.5, %v1139_v21  ;;  %2269 = vst [vmem:[%s4550_s16 + $0x238] sm:$0xff] %v1139_v21  ;;  %v1134_v34 = vadd.f32 %v3845_v3, %v1133_v37  ;;  %v2857_v36 = vpop.f32.mrf.mxu0 }
 0x2c8   :  { %v3253_v18 = vpop.eup %3252  ;;  %2994 = vmatprep.mubr.f32.mxu0 %v1352_v29  ;;  %v2937_v38 = vpop.f32.mrf.mxu1  ;;  %v1322_v39 = vmul.f32 %v3251_v20, %v1290_v22  ;;  %2236 = vst [vmem:[%s4550_s16 + $0x218] sm:$0xff] %v4155_v33  ;;  %v4166_v41 = vadd.f32 %v2857_v36, %v3840_v1  ;;  %v1355_v43 = vadd.f32 %v1323_v28, %v3986_v30  ;;  %v1295_v30 = vld [vmem:[%s4535_s1 + $0x88] sm:$0xff]  ;;  %v1296_v29 = vld [vmem:[%s4535_s1 + $0x90] sm:$0xff] }
 0x2c9   :  { %3266 = vpow2.f32 %v1254_v31  ;;  %v1260_v40 = vmul.f32 1.442695, %v1205_v32  ;;  %v1149_v11 = vadd.f32 %v2937_v38, %v3845_v3  ;;  %2995 = vmatmul.mubr.f32.gmra.mxu0 %v1353_v27  ;;  %v1204_v25 = vmul.f32 0.5, %v1134_v34  ;;  %2268 = vst [vmem:[%s4550_s16 + $0x220] sm:$0xff] %v1134_v34  ;;  %v895_v44 = vpop.f32.mrf.mxu0 }
 0x2ca   :  { %v1143_v45 = vpop.f32.mrf.mxu1  ;;  %v1354_v46 = vadd.f32 %v1322_v39, %v4005_v42  ;;  %v1325_v48 = vmul.f32 %v3253_v18, %v1293_v5  ;;  %v3255_v47 = vpop.eup %3254  ;;  %2239 = vst [vmem:[%s4550_s16 + $0x260] sm:$0xff] %v4166_v41  ;;  %v4185_v50 = vadd.f32 %v3840_v1, %v895_v44 }
 0x2cb   :  { %3268 = vpow2.f32 %v1260_v40  ;;  %v1207_v2 = vmul.f32 0.5, %v1149_v11  ;;  %2271 = vst [vmem:[%s4550_s16 + $0x268] sm:$0xff] %v1149_v11  ;;  %v1144_v42 = vadd.f32 %v3845_v3, %v1143_v45  ;;  %v1258_v53 = vmul.f32 1.442695, %v1204_v25  ;;  %v2860_v55 = vpop.f32.mrf.mxu0 }
 0x2cc   :  { %v3257_v51 = vpop.eup %3256  ;;  %2997 = vmatprep.mubr.f32.mxu0 %v1354_v46  ;;  %v2940_v56 = vpop.f32.mrf.mxu1  ;;  %v1324_v57 = vmul.f32 %v3255_v47, %v1292_v6  ;;  %2238 = vst [vmem:[%s4550_s16 + $0x248] sm:$0xff] %v4185_v50  ;;  %v4199_v61 = vadd.f32 %v2860_v55, %v3840_v1  ;;  %v1357_v4 = vadd.f32 %v1325_v48, %v4019_v49  ;;  %v1297_v49 = vld [vmem:[%s4535_s1 + $0x98] sm:$0xff]  ;;  %v1298_v48 = vld [vmem:[%s4535_s1 + $0xa0] sm:$0xff] }
 0x2cd   :  { %v1264_v59 = vmul.f32 1.442695, %v1207_v2  ;;  %v1206_v60 = vmul.f32 0.5, %v1144_v42  ;;  %2270 = vst [vmem:[%s4550_s16 + $0x250] sm:$0xff] %v1144_v42  ;;  %v1159_v19 = vadd.f32 %v2940_v56, %v3845_v3  ;;  %2998 = vmatmul.mubr.f32.gmra.mxu0 %v1355_v43  ;;  %3270 = vpow2.f32 %v1258_v53  ;;  %v905_v63 = vpop.f32.mrf.mxu0 }
 0x2ce   :  { %v3259_v13 = vpop.eup %3258  ;;  %v1153_v58 = vpop.f32.mrf.mxu1  ;;  %v1356_v52 = vadd.f32 %v1324_v57, %v4035_v62  ;;  %v1327_v7 = vmul.f32 %v3257_v51, %v1295_v30  ;;  %2241 = vst [vmem:[%s4550_s16 + $0x290] sm:$0xff] %v4199_v61  ;;  %v4215_v12 = vadd.f32 %v3840_v1, %v905_v63 }
 0x2cf   :  { %3272 = vpow2.f32 %v1264_v59  ;;  %v1262_v9 = vmul.f32 1.442695, %v1206_v60  ;;  %v1209_v10 = vmul.f32 0.5, %v1159_v19  ;;  %2273 = vst [vmem:[%s4550_s16 + $0x298] sm:$0xff] %v1159_v19  ;;  %v1154_v14 = vadd.f32 %v3845_v3, %v1153_v58  ;;  %v2863_v15 = vpop.f32.mrf.mxu0  ;;  %v1301_v60 = vld [vmem:[%s4535_s1 + $0xb8] sm:$0xff] }
 0x2d0   :  { %v3261_v62 = vpop.eup %3260  ;;  %3000 = vmatprep.mubr.f32.mxu0 %v1356_v52  ;;  %v2943_v21 = vpop.f32.mrf.mxu1  ;;  %v1326_v22 = vmul.f32 %v3259_v13, %v1294_v26  ;;  %2240 = vst [vmem:[%s4550_s16 + $0x278] sm:$0xff] %v4215_v12  ;;  %v4226_v23 = vadd.f32 %v2863_v15, %v3840_v1  ;;  %v1359_v5 = vadd.f32 %v1327_v7, %v4046_v8  ;;  %v1299_v8 = vld [vmem:[%s4535_s1 + $0xa8] sm:$0xff] }
 0x2d1   :  { %3274 = vpow2.f32 %v1262_v9  ;;  %v1268_v20 = vmul.f32 1.442695, %v1209_v10  ;;  %v1169_v37 = vadd.f32 %v2943_v21, %v3845_v3  ;;  %3001 = vmatmul.mubr.f32.gmra.mxu0 %v1357_v4  ;;  %v1208_v27 = vmul.f32 0.5, %v1154_v14  ;;  %2272 = vst [vmem:[%s4550_s16 + $0x280] sm:$0xff] %v1154_v14  ;;  %v915_v28 = vpop.f32.mrf.mxu0  ;;  %v1302_v9 = vld [vmem:[%s4535_s1 + $0xc0] sm:$0xff]  ;;  %v1303_v10 = vld [vmem:[%s4535_s1 + $0xc8] sm:$0xff] }
 0x2d2   :  { %v1163_v31 = vpop.f32.mrf.mxu1  ;;  %v1358_v32 = vadd.f32 %v1326_v22, %v4065_v24  ;;  %v1329_v18 = vmul.f32 %v3261_v62, %v1297_v49  ;;  %v3263_v34 = vpop.eup %3262  ;;  %2243 = vst [vmem:[%s4550_s16 + $0x2c0] sm:$0xff] %v4226_v23  ;;  %v4245_v38 = vadd.f32 %v3840_v1, %v915_v28  ;;  %v1305_v21 = vld [vmem:[%s4535_s1 + $0xd8] sm:$0xff]  ;;  %v1306_v28 = vld [vmem:[%s4535_s1 + $0xe0] sm:$0xff] }
 0x2d3   :  { %3276 = vpow2.f32 %v1268_v20  ;;  %v1211_v36 = vmul.f32 0.5, %v1169_v37  ;;  %2275 = vst [vmem:[%s4550_s16 + $0x2c8] sm:$0xff] %v1169_v37  ;;  %v1164_v24 = vadd.f32 %v3845_v3, %v1163_v31  ;;  %v1266_v40 = vmul.f32 1.442695, %v1208_v27  ;;  %v2866_v11 = vpop.f32.mrf.mxu0  ;;  %v1304_v20 = vld [vmem:[%s4535_s1 + $0xd0] sm:$0xff]  ;;  %v1307_v31 = vld [vmem:[%s4535_s1 + $0xe8] sm:$0xff] }
 0x2d4   :  { %v3265_v39 = vpop.eup %3264  ;;  %3003 = vmatprep.mubr.f32.mxu0 %v1358_v32  ;;  %v2946_v6 = vpop.f32.mrf.mxu1  ;;  %v1328_v25 = vmul.f32 %v3263_v34, %v1296_v29  ;;  %2242 = vst [vmem:[%s4550_s16 + $0x2a8] sm:$0xff] %v4245_v38  ;;  %v4259_v46 = vadd.f32 %v2866_v11, %v3840_v1  ;;  %v1361_v51 = vadd.f32 %v1329_v18, %v4079_v17 }
 0x2d5   :  { %v1272_v44 = vmul.f32 1.442695, %v1211_v36  ;;  %v1210_v45 = vmul.f32 0.5, %v1164_v24  ;;  %2274 = vst [vmem:[%s4550_s16 + $0x2b0] sm:$0xff] %v1164_v24  ;;  %v1179_v43 = vadd.f32 %v2946_v6, %v3845_v3  ;;  %3004 = vmatmul.mubr.f32.gmra.mxu0 %v1359_v5  ;;  %3278 = vpow2.f32 %v1266_v40  ;;  %v925_v2 = vpop.f32.mrf.mxu0  ;;  %v1309_v36 = vld [vmem:[%s4535_s1 + $0xf8] sm:$0xff] }
 0x2d6   :  { %v3267_v47 = vpop.eup %3266  ;;  %v1173_v42 = vpop.f32.mrf.mxu1  ;;  %v1360_v30 = vadd.f32 %v1328_v25, %v4095_v35  ;;  %v1331_v53 = vmul.f32 %v3265_v39, %v1299_v8  ;;  %2245 = vst [vmem:[%s4550_s16 + $0x2f0] sm:$0xff] %v4259_v46  ;;  %v4275_v57 = vadd.f32 %v3840_v1, %v925_v2  ;;  %v1300_v1 = vld [vmem:[%s4535_s1 + $0xb0] sm:$0xff]  ;;  %v1654_v25 = vld [vmem:[#allocation4] sm:$0xff]  ;;  %v1941_v2 = vld [vmem:[#allocation6 + $0x38] sm:$0xff] }
 0x2d7   :  { %3280 = vpow2.f32 %v1272_v44  ;;  %v1270_v55 = vmul.f32 1.442695, %v1210_v45  ;;  %v1213_v56 = vmul.f32 0.5, %v1179_v43  ;;  %2277 = vst [vmem:[%s4550_s16 + $0x2f8] sm:$0xff] %v1179_v43  ;;  %v1174_v35 = vadd.f32 %v3845_v3, %v1173_v42  ;;  %v1308_v8 = vld [vmem:[%s4535_s1 + $0xf0] sm:$0xff]  ;;  %3057 = vmatprep.subr.mxu1 %v1654_v25  ;;  %v1947_v45 = vld [vmem:[#allocation6 + $0x68] sm:$0xff] }
 0x2d8   :  { %v3269_v59 = vpop.eup %3268  ;;  %3006 = vmatprep.mubr.f32.mxu0 %v1360_v30  ;;  %v1330_v17 = vmul.f32 %v3267_v47, %v1298_v48  ;;  %2244 = vst [vmem:[%s4550_s16 + $0x2d8] sm:$0xff] %v4275_v57  ;;  %v1363_v63 = vadd.f32 %v1331_v53, %v4106_v54  ;;  %3058 = vmatpush3.msra.mxu1 %v1654_v25  ;;  %v1948_v44 = vld [vmem:[#allocation6 + $0x70] sm:$0xff]  ;;  %v1945_v43 = vld [vmem:[#allocation6 + $0x58] sm:$0xff]  ;;  %v1942_v47 = vld [vmem:[#allocation6 + $0x40] sm:$0xff] }
 0x2d9   :  { %3282 = vpow2.f32 %v1270_v55  ;;  %v1276_v19 = vmul.f32 1.442695, %v1213_v56  ;;  %3007 = vmatmul.mubr.f32.gmra.mxu0 %v1361_v51  ;;  %v1212_v26 = vmul.f32 0.5, %v1174_v35  ;;  %2276 = vst [vmem:[%s4550_s16 + $0x2e0] sm:$0xff] %v1174_v35  ;;  %v1333_v58 = vmul.f32 %v3269_v59, %v1301_v60  ;;  %v1944_v48 = vld [vmem:[#allocation6 + $0x50] sm:$0xff]  ;;  %v1939_v30 = vld [vmem:[#allocation6 + $0x28] sm:$0xff] }
 0x2da   :  { %v1362_v3 = vadd.f32 %v1330_v17, %v4125_v0  ;;  %v3271_v13 = vpop.eup %3270  ;;  %v1940_v42 = vld [vmem:[#allocation6 + $0x30] sm:$0xff]  ;;  %v1938_v51 = vld [vmem:[#allocation6 + $0x20] sm:$0xff]  ;;  %v1937_v53 = vld [vmem:[#allocation6 + $0x18] sm:$0xff] }
 0x2db   :  { %3284 = vpow2.f32 %v1276_v19  ;;  %v1274_v4 = vmul.f32 1.442695, %v1212_v26  ;;  %v1332_v7 = vmul.f32 %v3271_v13, %v1300_v1  ;;  %v1365_v54 = vadd.f32 %v1333_v58, %v4139_v16  ;;  %v1936_v55 = vld [vmem:[#allocation6 + $0x10] sm:$0xff]  ;;  %v1935_v56 = vld [vmem:[#allocation6 + $0x8] sm:$0xff] }
 0x2dc   :  { %v3273_v52 = vpop.eup %3272  ;;  %3009 = vmatprep.mubr.f32.mxu0 %v1362_v3 }
 0x2dd   :  { %3010 = vmatmul.mubr.f32.gmra.mxu0 %v1363_v63  ;;  %3286 = vpow2.f32 %v1274_v4  ;;  %v1364_v0 = vadd.f32 %v1332_v7, %v4155_v33  ;;  %v1335_v14 = vmul.f32 %v3273_v52, %v1303_v10 }
 0x2de   :  { %v3275_v49 = vpop.eup %3274 }
 0x2df   :  { %v1334_v62 = vmul.f32 %v3275_v49, %v1302_v9  ;;  %3012 = vmatprep.mubr.f32.mxu0 %v1364_v0  ;;  %v1367_v33 = vadd.f32 %v1335_v14, %v4166_v41 }
 0x2e0   :  { %v3277_v15 = vpop.eup %3276 }
 0x2e1   :  { %3013 = vmatmul.mubr.f32.gmra.mxu0 %v1365_v54  ;;  %v1366_v22 = vadd.f32 %v1334_v62, %v4185_v50  ;;  %v1337_v16 = vmul.f32 %v3277_v15, %v1305_v21 }
 0x2e2   :  { %v3279_v37 = vpop.eup %3278 }
 0x2e3   :  { %3015 = vmatprep.mubr.f32.mxu0 %v1366_v22  ;;  %v1336_v27 = vmul.f32 %v3279_v37, %v1304_v20  ;;  %v1369_v5 = vadd.f32 %v1337_v16, %v4199_v61 }
 0x2e4   :  { %v3281_v29 = vpop.eup %3280 }
 0x2e5   :  { %3016 = vmatmul.mubr.f32.gmra.mxu0 %v1367_v33  ;;  %v1368_v32 = vadd.f32 %v1336_v27, %v4215_v12  ;;  %v1339_v34 = vmul.f32 %v3281_v29, %v1307_v31 }
 0x2e6   :  { %v3283_v50 = vpop.eup %3282 }
 0x2e7   :  { %v1338_v18 = vmul.f32 %v3283_v50, %v1306_v28  ;;  %3018 = vmatprep.mubr.f32.mxu0 %v1368_v32  ;;  %v1371_v12 = vadd.f32 %v1339_v34, %v4226_v23  ;;  %v1946_v23 = vld [vmem:[#allocation6 + $0x60] sm:$0xff] }
 0x2e8   :  { %v3285_v41 = vpop.eup %3284 }
 0x2e9   :  { %3019 = vmatmul.mubr.f32.gmra.mxu0 %v1369_v5  ;;  %v1370_v24 = vadd.f32 %v1338_v18, %v4245_v38  ;;  %v1341_v61 = vmul.f32 %v3285_v41, %v1309_v36  ;;  %v1949_v38 = vld [vmem:[#allocation6 + $0x78] sm:$0xff] }
 0x2ea   :  { %v3287_v39 = vpop.eup %3286  ;;  %3107 = vmatprep.subr.mxu0 %v1949_v38 }
 0x2eb   :  { %3021 = vmatprep.mubr.f32.mxu0 %v1370_v24  ;;  %v1340_v40 = vmul.f32 %v3287_v39, %v1308_v8  ;;  %v1373_v6 = vadd.f32 %v1341_v61, %v4259_v46  ;;  %3108 = vmatpush3.msra.mxu0 %v1949_v38  ;;  %v1943_v46 = vld [vmem:[#allocation6 + $0x48] sm:$0xff] }
 0x2ec   :  { %3109 = vmatprep.subr.mxu0 %v1948_v44 }
 0x2ed   :  { %3022 = vmatmul.mubr.f32.gmra.mxu0 %v1371_v12  ;;  %v1372_v11 = vadd.f32 %v1340_v40, %v4275_v57  ;;  %v4330_v57 = vld [vmem:[%s4545_s11] ss:$0 sm:$0xff] }
 0x2ee   :  { %3110 = vmatpush3.msra.mxu0 %v1948_v44 }
 0x2ef   :  { %3024 = vmatprep.mubr.f32.mxu0 %v1372_v11  ;;  %3111 = vmatprep.subr.mxu0 %v1947_v45 }
 0x2f0   :  { %3112 = vmatpush3.msra.mxu0 %v1947_v45 }
 0x2f1   :  { %3025 = vmatmul.mubr.f32.gmra.mxu0 %v1373_v6  ;;  %3113 = vmatprep.subr.mxu0 %v1946_v23 }
 0x2f2   :  { %3114 = vmatpush3.msra.mxu0 %v1946_v23 }
 0x2f3   :  { %3115 = vmatprep.subr.mxu0 %v1945_v43 }
 0x2f4   :  { %3116 = vmatpush3.msra.mxu0 %v1945_v43 }
 0x2f5   :  { %3117 = vmatprep.subr.mxu0 %v1944_v48 }
 0x2f6   :  { %3118 = vmatpush3.msra.mxu0 %v1944_v48 }
 0x2f7   :  { %3119 = vmatprep.subr.mxu0 %v1943_v46 }
 0x2f8   :  { %3120 = vmatpush3.msra.mxu0 %v1943_v46 }
 0x2f9   :  { %3121 = vmatprep.subr.mxu0 %v1942_v47 }
 0x2fa   :  { %3122 = vmatpush3.msra.mxu0 %v1942_v47 }
 0x2fb   :  { %3123 = vmatprep.subr.mxu0 %v1941_v2 }
 0x2fc   :  { %3124 = vmatpush3.msra.mxu0 %v1941_v2 }
 0x2fd   :  { %3125 = vmatprep.subr.mxu0 %v1940_v42 }
 0x2fe   :  { %3126 = vmatpush3.msra.mxu0 %v1940_v42 }
 0x2ff   :  { %3127 = vmatprep.subr.mxu0 %v1939_v30 }
 0x300   :  { %3128 = vmatpush3.msra.mxu0 %v1939_v30 }
 0x301   :  { %3129 = vmatprep.subr.mxu0 %v1938_v51 }
 0x302   :  { %3130 = vmatpush3.msra.mxu0 %v1938_v51 }
 0x303   :  { %3131 = vmatprep.subr.mxu0 %v1937_v53 }
 0x304   :  { %3132 = vmatpush3.msra.mxu0 %v1937_v53 }
 0x305   :  { %3133 = vmatprep.subr.mxu0 %v1936_v55 }
 0x306   :  { %3134 = vmatpush3.msra.mxu0 %v1936_v55 }
 0x307   :  { %3135 = vmatprep.subr.mxu0 %v1935_v56 }
 0x308   :  { %3136 = vmatpush3.msra.mxu0 %v1935_v56 }
 0x373   :  { %v2981_v59 = vpop.f32.mrf.mxu0 }
 0x374   :  { %v1469_v35 = vadd.f32 %v2981_v59, %v4330_v57 }
 0x375   :  { %v1463_v17 = vpop.f32.mrf.mxu0 }
 0x376   :  { %v1464_v60 = vadd.f32 %v4330_v57, %v1463_v17  ;;  %v1623_v26 = vmax.f32 %v1469_v35, 0.0 }
 0x378   :  { %v1622_v1 = vmax.f32 %v1464_v60, 0.0 }
 0x379   :  { %v2984_v19 = vpop.f32.mrf.mxu0 }
 0x37a   :  { %v1479_v3 = vadd.f32 %v2984_v19, %v4330_v57  ;;  %3059 = vmatprep.mubr.f32.mxu1 %v1622_v1 }
 0x37b   :  { %v1473_v13 = vpop.f32.mrf.mxu0  ;;  %3060 = vmatmul.mubr.f32.vlgmr.msra.gmra.mxu1 %v1623_v26 }
 0x37c   :  { %v1474_v63 = vadd.f32 %v4330_v57, %v1473_v13  ;;  %v1625_v4 = vmax.f32 %v1479_v3, 0.0 }
 0x37d   :  { %v2987_v58 = vpop.f32.mrf.mxu0 }
 0x37e   :  { %v1624_v52 = vmax.f32 %v1474_v63, 0.0  ;;  %v1489_v7 = vadd.f32 %v2987_v58, %v4330_v57 }
 0x37f   :  { %v1483_v9 = vpop.f32.mrf.mxu0 }
 0x380   :  { %v1484_v10 = vadd.f32 %v4330_v57, %v1483_v9  ;;  %3062 = vmatprep.mubr.f32.mxu1 %v1624_v52  ;;  %v1627_v54 = vmax.f32 %v1489_v7, 0.0 }
 0x381   :  { %v2990_v49 = vpop.f32.mrf.mxu0  ;;  %3063 = vmatmul.mubr.f32.gmra.mxu1 %v1625_v4 }
 0x382   :  { %v1626_v0 = vmax.f32 %v1484_v10, 0.0  ;;  %v1499_v62 = vadd.f32 %v2990_v49, %v4330_v57 }
 0x383   :  { %v1493_v14 = vpop.f32.mrf.mxu0 }
 0x384   :  { %v1494_v15 = vadd.f32 %v4330_v57, %v1493_v14  ;;  %3065 = vmatprep.mubr.f32.mxu1 %v1626_v0  ;;  %v1629_v20 = vmax.f32 %v1499_v62, 0.0 }
 0x385   :  { %v2993_v21 = vpop.f32.mrf.mxu0  ;;  %3066 = vmatmul.mubr.f32.gmra.mxu1 %v1627_v54 }
 0x386   :  { %v1628_v22 = vmax.f32 %v1494_v15, 0.0  ;;  %v1509_v37 = vadd.f32 %v2993_v21, %v4330_v57 }
 0x387   :  { %v1503_v33 = vpop.f32.mrf.mxu0 }
 0x388   :  { %v1504_v16 = vadd.f32 %v4330_v57, %v1503_v33  ;;  %3068 = vmatprep.mubr.f32.mxu1 %v1628_v22  ;;  %v1631_v28 = vmax.f32 %v1509_v37, 0.0 }
 0x389   :  { %v2996_v29 = vpop.f32.mrf.mxu0  ;;  %3069 = vmatmul.mubr.f32.gmra.mxu1 %v1629_v20 }
 0x38a   :  { %v1630_v27 = vmax.f32 %v1504_v16, 0.0  ;;  %v1519_v31 = vadd.f32 %v2996_v29, %v4330_v57 }
 0x38b   :  { %v1513_v50 = vpop.f32.mrf.mxu0 }
 0x38c   :  { %v1514_v32 = vadd.f32 %v4330_v57, %v1513_v50  ;;  %3071 = vmatprep.mubr.f32.mxu1 %v1630_v27  ;;  %v1633_v34 = vmax.f32 %v1519_v31, 0.0 }
 0x38d   :  { %v2999_v5 = vpop.f32.mrf.mxu0  ;;  %3072 = vmatmul.mubr.f32.gmra.mxu1 %v1631_v28 }
 0x38e   :  { %v1632_v18 = vmax.f32 %v1514_v32, 0.0  ;;  %v1529_v41 = vadd.f32 %v2999_v5, %v4330_v57  ;;  %v1934_v32 = vld [vmem:[#allocation6] sm:$0xff] }
 0x38f   :  { %v1523_v36 = vpop.f32.mrf.mxu0  ;;  %3137 = vmatprep.subr.mxu0 %v1934_v32  ;;  %v4367_v5 = vld [vmem:[%s4547_s13] ss:$0 sm:$0xff] }
 0x390   :  { %v1524_v24 = vadd.f32 %v4330_v57, %v1523_v36  ;;  %3074 = vmatprep.mubr.f32.mxu1 %v1632_v18  ;;  %v1635_v12 = vmax.f32 %v1529_v41, 0.0  ;;  %3138 = vmatpush3.msra.mxu0 %v1934_v32 }
 0x391   :  { %v3002_v8 = vpop.f32.mrf.mxu0  ;;  %3075 = vmatmul.mubr.f32.gmra.mxu1 %v1633_v34 }
 0x392   :  { %v1634_v39 = vmax.f32 %v1524_v24, 0.0  ;;  %v1539_v61 = vadd.f32 %v3002_v8, %v4330_v57 }
 0x393   :  { %v1533_v40 = vpop.f32.mrf.mxu0 }
 0x394   :  { %v1534_v11 = vadd.f32 %v4330_v57, %v1533_v40  ;;  %3077 = vmatprep.mubr.f32.mxu1 %v1634_v39  ;;  %v1637_v38 = vmax.f32 %v1539_v61, 0.0 }
 0x395   :  { %v3005_v6 = vpop.f32.mrf.mxu0  ;;  %3078 = vmatmul.mubr.f32.gmra.mxu1 %v1635_v12 }
 0x396   :  { %v1636_v25 = vmax.f32 %v1534_v11, 0.0  ;;  %v1549_v44 = vadd.f32 %v3005_v6, %v4330_v57 }
 0x397   :  { %v1543_v45 = vpop.f32.mrf.mxu0 }
 0x398   :  { %v1544_v23 = vadd.f32 %v4330_v57, %v1543_v45  ;;  %3080 = vmatprep.mubr.f32.mxu1 %v1636_v25  ;;  %v1639_v46 = vmax.f32 %v1549_v44, 0.0 }
 0x399   :  { %v3008_v43 = vpop.f32.mrf.mxu0  ;;  %3081 = vmatmul.mubr.f32.gmra.mxu1 %v1637_v38 }
 0x39a   :  { %v1638_v48 = vmax.f32 %v1544_v23, 0.0  ;;  %v1559_v47 = vadd.f32 %v3008_v43, %v4330_v57 }
 0x39b   :  { %v1553_v2 = vpop.f32.mrf.mxu0 }
 0x39c   :  { %v1554_v42 = vadd.f32 %v4330_v57, %v1553_v2  ;;  %3083 = vmatprep.mubr.f32.mxu1 %v1638_v48  ;;  %v1641_v53 = vmax.f32 %v1559_v47, 0.0 }
 0x39d   :  { %v3011_v30 = vpop.f32.mrf.mxu0  ;;  %3084 = vmatmul.mubr.f32.gmra.mxu1 %v1639_v46 }
 0x39e   :  { %v1640_v51 = vmax.f32 %v1554_v42, 0.0  ;;  %v1569_v55 = vadd.f32 %v3011_v30, %v4330_v57 }
 0x39f   :  { %v1563_v56 = vpop.f32.mrf.mxu0 }
 0x3a0   :  { %v1564_v59 = vadd.f32 %v4330_v57, %v1563_v56  ;;  %3086 = vmatprep.mubr.f32.mxu1 %v1640_v51  ;;  %v1643_v60 = vmax.f32 %v1569_v55, 0.0 }
 0x3a1   :  { %v3014_v35 = vpop.f32.mrf.mxu0  ;;  %3087 = vmatmul.mubr.f32.gmra.mxu1 %v1641_v53 }
 0x3a2   :  { %v1642_v17 = vmax.f32 %v1564_v59, 0.0  ;;  %v1579_v19 = vadd.f32 %v3014_v35, %v4330_v57 }
 0x3a3   :  { %v1573_v1 = vpop.f32.mrf.mxu0 }
 0x3a4   :  { %v1574_v26 = vadd.f32 %v4330_v57, %v1573_v1  ;;  %3089 = vmatprep.mubr.f32.mxu1 %v1642_v17  ;;  %v1645_v63 = vmax.f32 %v1579_v19, 0.0 }
 0x3a5   :  { %v3017_v3 = vpop.f32.mrf.mxu0  ;;  %3090 = vmatmul.mubr.f32.gmra.mxu1 %v1643_v60 }
 0x3a6   :  { %v1644_v13 = vmax.f32 %v1574_v26, 0.0  ;;  %v1589_v58 = vadd.f32 %v3017_v3, %v4330_v57 }
 0x3a7   :  { %v1583_v52 = vpop.f32.mrf.mxu0 }
 0x3a8   :  { %v1584_v4 = vadd.f32 %v4330_v57, %v1583_v52  ;;  %3092 = vmatprep.mubr.f32.mxu1 %v1644_v13  ;;  %v1647_v10 = vmax.f32 %v1589_v58, 0.0 }
 0x3a9   :  { %v3020_v7 = vpop.f32.mrf.mxu0  ;;  %3093 = vmatmul.mubr.f32.gmra.mxu1 %v1645_v63 }
 0x3aa   :  { %v1646_v9 = vmax.f32 %v1584_v4, 0.0  ;;  %v1599_v49 = vadd.f32 %v3020_v7, %v4330_v57 }
 0x3ab   :  { %v1593_v0 = vpop.f32.mrf.mxu0 }
 0x3ac   :  { %v1594_v54 = vadd.f32 %v4330_v57, %v1593_v0  ;;  %3095 = vmatprep.mubr.f32.mxu1 %v1646_v9  ;;  %v1649_v15 = vmax.f32 %v1599_v49, 0.0 }
 0x3ad   :  { %v3023_v62 = vpop.f32.mrf.mxu0  ;;  %3096 = vmatmul.mubr.f32.gmra.mxu1 %v1647_v10 }
 0x3ae   :  { %v1648_v14 = vmax.f32 %v1594_v54, 0.0  ;;  %v1609_v21 = vadd.f32 %v3023_v62, %v4330_v57 }
 0x3af   :  { %v1603_v22 = vpop.f32.mrf.mxu0 }
 0x3b0   :  { %v1604_v20 = vadd.f32 %v4330_v57, %v1603_v22  ;;  %3098 = vmatprep.mubr.f32.mxu1 %v1648_v14  ;;  %v1651_v16 = vmax.f32 %v1609_v21, 0.0 }
 0x3b1   :  { %v3026_v37 = vpop.f32.mrf.mxu0  ;;  %3099 = vmatmul.mubr.f32.gmra.mxu1 %v1649_v15 }
 0x3b2   :  { %v1650_v33 = vmax.f32 %v1604_v20, 0.0  ;;  %v1619_v29 = vadd.f32 %v3026_v37, %v4330_v57 }
 0x3b3   :  { %v1613_v27 = vpop.f32.mrf.mxu0 }
 0x3b4   :  { %v1614_v28 = vadd.f32 %v4330_v57, %v1613_v27  ;;  %3101 = vmatprep.mubr.f32.mxu1 %v1650_v33  ;;  %v1653_v50 = vmax.f32 %v1619_v29, 0.0 }
 0x3b5   :  { %3102 = vmatmul.mubr.f32.gmra.mxu1 %v1651_v16 }
 0x3b6   :  { %v1652_v31 = vmax.f32 %v1614_v28, 0.0 }
 0x3b8   :  { %3104 = vmatprep.mubr.f32.mxu1 %v1652_v31 }
 0x3b9   :  { %3105 = vmatmul.mubr.f32.gmra.mxu1 %v1653_v50 }
 0x43b   :  { %v3061_v18 = vpop.f32.mrf.mxu1 }
 0x43c   :  { %v1749_v34 = vadd.f32 %v3061_v18, %v4367_v5 }
 0x43d   :  { %v1743_v41 = vpop.f32.mrf.mxu1 }
 0x43e   :  { %v1744_v57 = vadd.f32 %v4367_v5, %v1743_v41  ;;  %v1903_v8 = vmax.f32 %v1749_v34, 0.0 }
 0x440   :  { %v1902_v24 = vmax.f32 %v1744_v57, 0.0 }
 0x441   :  { %v3064_v36 = vpop.f32.mrf.mxu1 }
 0x442   :  { %v1759_v39 = vadd.f32 %v3064_v36, %v4367_v5  ;;  %3139 = vmatprep.mubr.f32.mxu0 %v1902_v24 }
 0x443   :  { %v1753_v12 = vpop.f32.mrf.mxu1  ;;  %3140 = vmatmul.mubr.f32.vlgmr.msra.gmra.mxu0 %v1903_v8 }
 0x444   :  { %v1754_v61 = vadd.f32 %v4367_v5, %v1753_v12  ;;  %v1905_v6 = vmax.f32 %v1759_v39, 0.0 }
 0x445   :  { %v3067_v40 = vpop.f32.mrf.mxu1 }
 0x446   :  { %v1904_v11 = vmax.f32 %v1754_v61, 0.0  ;;  %v1769_v25 = vadd.f32 %v3067_v40, %v4367_v5 }
 0x447   :  { %v1763_v38 = vpop.f32.mrf.mxu1 }
 0x448   :  { %v1764_v44 = vadd.f32 %v4367_v5, %v1763_v38  ;;  %3142 = vmatprep.mubr.f32.mxu0 %v1904_v11  ;;  %v1907_v43 = vmax.f32 %v1769_v25, 0.0 }
 0x449   :  { %v3070_v45 = vpop.f32.mrf.mxu1  ;;  %3143 = vmatmul.mubr.f32.gmra.mxu0 %v1905_v6 }
 0x44a   :  { %v1906_v23 = vmax.f32 %v1764_v44, 0.0  ;;  %v1779_v48 = vadd.f32 %v3070_v45, %v4367_v5 }
 0x44b   :  { %v1773_v46 = vpop.f32.mrf.mxu1 }
 0x44c   :  { %v1774_v47 = vadd.f32 %v4367_v5, %v1773_v46  ;;  %3145 = vmatprep.mubr.f32.mxu0 %v1906_v23  ;;  %v1909_v30 = vmax.f32 %v1779_v48, 0.0 }
 0x44d   :  { %v3073_v2 = vpop.f32.mrf.mxu1  ;;  %3146 = vmatmul.mubr.f32.gmra.mxu0 %v1907_v43 }
 0x44e   :  { %v1908_v42 = vmax.f32 %v1774_v47, 0.0  ;;  %v1789_v51 = vadd.f32 %v3073_v2, %v4367_v5 }
 0x44f   :  { %v1783_v53 = vpop.f32.mrf.mxu1 }
 0x450   :  { %v1784_v55 = vadd.f32 %v4367_v5, %v1783_v53  ;;  %3148 = vmatprep.mubr.f32.mxu0 %v1908_v42  ;;  %v1911_v35 = vmax.f32 %v1789_v51, 0.0 }
 0x451   :  { %v3076_v56 = vpop.f32.mrf.mxu1  ;;  %3149 = vmatmul.mubr.f32.gmra.mxu0 %v1909_v30 }
 0x452   :  { %v1910_v59 = vmax.f32 %v1784_v55, 0.0  ;;  %v1799_v17 = vadd.f32 %v3076_v56, %v4367_v5 }
 0x453   :  { %v1793_v60 = vpop.f32.mrf.mxu1 }
 0x454   :  { %v1794_v19 = vadd.f32 %v4367_v5, %v1793_v60  ;;  %3151 = vmatprep.mubr.f32.mxu0 %v1910_v59  ;;  %v1913_v3 = vmax.f32 %v1799_v17, 0.0 }
 0x455   :  { %v3079_v1 = vpop.f32.mrf.mxu1  ;;  %3152 = vmatmul.mubr.f32.gmra.mxu0 %v1911_v35 }
 0x456   :  { %v1912_v26 = vmax.f32 %v1794_v19, 0.0  ;;  %v1809_v13 = vadd.f32 %v3079_v1, %v4367_v5  ;;  %v4404_v19 = vld [vmem:[%s4549_s15] ss:$0 sm:$0xff] }
 0x457   :  { %v1803_v63 = vpop.f32.mrf.mxu1 }
 0x458   :  { %v1804_v58 = vadd.f32 %v4367_v5, %v1803_v63  ;;  %3154 = vmatprep.mubr.f32.mxu0 %v1912_v26  ;;  %v1915_v7 = vmax.f32 %v1809_v13, 0.0 }
 0x459   :  { %v3082_v52 = vpop.f32.mrf.mxu1  ;;  %3155 = vmatmul.mubr.f32.gmra.mxu0 %v1913_v3 }
 0x45a   :  { %v1914_v4 = vmax.f32 %v1804_v58, 0.0  ;;  %v1819_v9 = vadd.f32 %v3082_v52, %v4367_v5 }
 0x45b   :  { %v1813_v10 = vpop.f32.mrf.mxu1 }
 0x45c   :  { %v1814_v49 = vadd.f32 %v4367_v5, %v1813_v10  ;;  %3157 = vmatprep.mubr.f32.mxu0 %v1914_v4  ;;  %v1917_v62 = vmax.f32 %v1819_v9, 0.0 }
 0x45d   :  { %v3085_v0 = vpop.f32.mrf.mxu1  ;;  %3158 = vmatmul.mubr.f32.gmra.mxu0 %v1915_v7 }
 0x45e   :  { %v1916_v54 = vmax.f32 %v1814_v49, 0.0  ;;  %v1829_v14 = vadd.f32 %v3085_v0, %v4367_v5 }
 0x45f   :  { %v1823_v15 = vpop.f32.mrf.mxu1 }
 0x460   :  { %v1824_v21 = vadd.f32 %v4367_v5, %v1823_v15  ;;  %3160 = vmatprep.mubr.f32.mxu0 %v1916_v54  ;;  %v1919_v37 = vmax.f32 %v1829_v14, 0.0 }
 0x461   :  { %v3088_v22 = vpop.f32.mrf.mxu1  ;;  %3161 = vmatmul.mubr.f32.gmra.mxu0 %v1917_v62 }
 0x462   :  { %v1918_v20 = vmax.f32 %v1824_v21, 0.0  ;;  %v1839_v33 = vadd.f32 %v3088_v22, %v4367_v5 }
 0x463   :  { %v1833_v16 = vpop.f32.mrf.mxu1 }
 0x464   :  { %v1834_v29 = vadd.f32 %v4367_v5, %v1833_v16  ;;  %3163 = vmatprep.mubr.f32.mxu0 %v1918_v20  ;;  %v1921_v31 = vmax.f32 %v1839_v33, 0.0 }
 0x465   :  { %v3091_v27 = vpop.f32.mrf.mxu1  ;;  %3164 = vmatmul.mubr.f32.gmra.mxu0 %v1919_v37 }
 0x466   :  { %v1920_v28 = vmax.f32 %v1834_v29, 0.0  ;;  %v1849_v50 = vadd.f32 %v3091_v27, %v4367_v5 }
 0x467   :  { %v1843_v32 = vpop.f32.mrf.mxu1 }
 0x468   :  { %v1844_v18 = vadd.f32 %v4367_v5, %v1843_v32  ;;  %3166 = vmatprep.mubr.f32.mxu0 %v1920_v28  ;;  %v1923_v57 = vmax.f32 %v1849_v50, 0.0 }
 0x469   :  { %v3094_v34 = vpop.f32.mrf.mxu1  ;;  %3167 = vmatmul.mubr.f32.gmra.mxu0 %v1921_v31 }
 0x46a   :  { %v1922_v41 = vmax.f32 %v1844_v18, 0.0  ;;  %v1859_v36 = vadd.f32 %v3094_v34, %v4367_v5 }
 0x46b   :  { %v1853_v24 = vpop.f32.mrf.mxu1 }
 0x46c   :  { %v1854_v8 = vadd.f32 %v4367_v5, %v1853_v24  ;;  %3169 = vmatprep.mubr.f32.mxu0 %v1922_v41  ;;  %v1925_v61 = vmax.f32 %v1859_v36, 0.0 }
 0x46d   :  { %v3097_v39 = vpop.f32.mrf.mxu1  ;;  %3170 = vmatmul.mubr.f32.gmra.mxu0 %v1923_v57 }
 0x46e   :  { %v1924_v12 = vmax.f32 %v1854_v8, 0.0  ;;  %v1869_v40 = vadd.f32 %v3097_v39, %v4367_v5 }
 0x46f   :  { %v1863_v11 = vpop.f32.mrf.mxu1 }
 0x470   :  { %v1864_v6 = vadd.f32 %v4367_v5, %v1863_v11  ;;  %3172 = vmatprep.mubr.f32.mxu0 %v1924_v12  ;;  %v1927_v44 = vmax.f32 %v1869_v40, 0.0 }
 0x471   :  { %v3100_v25 = vpop.f32.mrf.mxu1  ;;  %3173 = vmatmul.mubr.f32.gmra.mxu0 %v1925_v61 }
 0x472   :  { %v1926_v38 = vmax.f32 %v1864_v6, 0.0  ;;  %v1879_v45 = vadd.f32 %v3100_v25, %v4367_v5 }
 0x473   :  { %v1873_v23 = vpop.f32.mrf.mxu1 }
 0x474   :  { %v1874_v43 = vadd.f32 %v4367_v5, %v1873_v23  ;;  %3175 = vmatprep.mubr.f32.mxu0 %v1926_v38  ;;  %v1929_v47 = vmax.f32 %v1879_v45, 0.0 }
 0x475   :  { %v3103_v48 = vpop.f32.mrf.mxu1  ;;  %3176 = vmatmul.mubr.f32.gmra.mxu0 %v1927_v44 }
 0x476   :  { %v1928_v46 = vmax.f32 %v1874_v43, 0.0  ;;  %v1889_v2 = vadd.f32 %v3103_v48, %v4367_v5 }
 0x477   :  { %v1883_v42 = vpop.f32.mrf.mxu1 }
 0x478   :  { %v1884_v30 = vadd.f32 %v4367_v5, %v1883_v42  ;;  %3178 = vmatprep.mubr.f32.mxu0 %v1928_v46  ;;  %v1931_v55 = vmax.f32 %v1889_v2, 0.0 }
 0x479   :  { %v3106_v51 = vpop.f32.mrf.mxu1  ;;  %3179 = vmatmul.mubr.f32.gmra.mxu0 %v1929_v47 }
 0x47a   :  { %v1930_v53 = vmax.f32 %v1884_v30, 0.0  ;;  %v1899_v56 = vadd.f32 %v3106_v51, %v4367_v5 }
 0x47b   :  { %v1893_v59 = vpop.f32.mrf.mxu1 }
 0x47c   :  { %v1894_v35 = vadd.f32 %v4367_v5, %v1893_v59  ;;  %3181 = vmatprep.mubr.f32.mxu0 %v1930_v53  ;;  %v1933_v60 = vmax.f32 %v1899_v56, 0.0 }
 0x47d   :  { %3182 = vmatmul.mubr.f32.gmra.mxu0 %v1931_v55 }
 0x47e   :  { %v1932_v17 = vmax.f32 %v1894_v35, 0.0 }
 0x480   :  { %3184 = vmatprep.mubr.f32.mxu0 %v1932_v17 }
 0x481   :  { %3185 = vmatmul.mubr.f32.gmra.mxu0 %v1933_v60 }
 0x503   :  { %v3141_v1 = vpop.f32.mrf.mxu0 }
 0x504   :  { %v2029_v26 = vadd.f32 %v3141_v1, %v4404_v19 }
 0x505   :  { %v2023_v3 = vpop.f32.mrf.mxu0 }
 0x506   :  { %2183 = vst [vmem:[%s4550_s16 + $0x18] sm:$0xff] %v2029_v26  ;;  %v2024_v5 = vadd.f32 %v4404_v19, %v2023_v3 }
 0x508   :  { %2182 = vst [vmem:[%s4550_s16] sm:$0xff] %v2024_v5 }
 0x509   :  { %v3144_v13 = vpop.f32.mrf.mxu0 }
 0x50a   :  { %v2039_v63 = vadd.f32 %v3144_v13, %v4404_v19 }
 0x50b   :  { %v2033_v58 = vpop.f32.mrf.mxu0 }
 0x50c   :  { %2185 = vst [vmem:[%s4550_s16 + $0x48] sm:$0xff] %v2039_v63  ;;  %v2034_v52 = vadd.f32 %v4404_v19, %v2033_v58 }
 0x50d   :  { %v3147_v4 = vpop.f32.mrf.mxu0 }
 0x50e   :  { %2184 = vst [vmem:[%s4550_s16 + $0x30] sm:$0xff] %v2034_v52  ;;  %v2049_v7 = vadd.f32 %v3147_v4, %v4404_v19 }
 0x50f   :  { %v2043_v9 = vpop.f32.mrf.mxu0 }
 0x510   :  { %2187 = vst [vmem:[%s4550_s16 + $0x78] sm:$0xff] %v2049_v7  ;;  %v2044_v10 = vadd.f32 %v4404_v19, %v2043_v9 }
 0x511   :  { %v3150_v49 = vpop.f32.mrf.mxu0 }
 0x512   :  { %2186 = vst [vmem:[%s4550_s16 + $0x60] sm:$0xff] %v2044_v10  ;;  %v2059_v0 = vadd.f32 %v3150_v49, %v4404_v19 }
 0x513   :  { %v2053_v54 = vpop.f32.mrf.mxu0 }
 0x514   :  { %2189 = vst [vmem:[%s4550_s16 + $0xa8] sm:$0xff] %v2059_v0  ;;  %v2054_v62 = vadd.f32 %v4404_v19, %v2053_v54 }
 0x515   :  { %v3153_v14 = vpop.f32.mrf.mxu0 }
 0x516   :  { %2188 = vst [vmem:[%s4550_s16 + $0x90] sm:$0xff] %v2054_v62  ;;  %v2069_v15 = vadd.f32 %v3153_v14, %v4404_v19 }
 0x517   :  { %v2063_v21 = vpop.f32.mrf.mxu0 }
 0x518   :  { %2191 = vst [vmem:[%s4550_s16 + $0xd8] sm:$0xff] %v2069_v15  ;;  %v2064_v22 = vadd.f32 %v4404_v19, %v2063_v21 }
 0x519   :  { %v3156_v20 = vpop.f32.mrf.mxu0 }
 0x51a   :  { %2190 = vst [vmem:[%s4550_s16 + $0xc0] sm:$0xff] %v2064_v22  ;;  %v2079_v37 = vadd.f32 %v3156_v20, %v4404_v19 }
 0x51b   :  { %v2073_v33 = vpop.f32.mrf.mxu0 }
 0x51c   :  { %2193 = vst [vmem:[%s4550_s16 + $0x108] sm:$0xff] %v2079_v37  ;;  %v2074_v16 = vadd.f32 %v4404_v19, %v2073_v33 }
 0x51d   :  { %v3159_v29 = vpop.f32.mrf.mxu0 }
 0x51e   :  { %2192 = vst [vmem:[%s4550_s16 + $0xf0] sm:$0xff] %v2074_v16  ;;  %v2089_v27 = vadd.f32 %v3159_v29, %v4404_v19 }
 0x51f   :  { %v2083_v28 = vpop.f32.mrf.mxu0 }
 0x520   :  { %2195 = vst [vmem:[%s4550_s16 + $0x138] sm:$0xff] %v2089_v27  ;;  %v2084_v31 = vadd.f32 %v4404_v19, %v2083_v28 }
 0x521   :  { %v3162_v50 = vpop.f32.mrf.mxu0 }
 0x522   :  { %2194 = vst [vmem:[%s4550_s16 + $0x120] sm:$0xff] %v2084_v31  ;;  %v2099_v32 = vadd.f32 %v3162_v50, %v4404_v19 }
 0x523   :  { %v2093_v18 = vpop.f32.mrf.mxu0 }
 0x524   :  { %2197 = vst [vmem:[%s4550_s16 + $0x168] sm:$0xff] %v2099_v32  ;;  %v2094_v34 = vadd.f32 %v4404_v19, %v2093_v18 }
 0x525   :  { %v3165_v41 = vpop.f32.mrf.mxu0 }
 0x526   :  { %2196 = vst [vmem:[%s4550_s16 + $0x150] sm:$0xff] %v2094_v34  ;;  %v2109_v57 = vadd.f32 %v3165_v41, %v4404_v19 }
 0x527   :  { %v2103_v36 = vpop.f32.mrf.mxu0 }
 0x528   :  { %2199 = vst [vmem:[%s4550_s16 + $0x198] sm:$0xff] %v2109_v57  ;;  %v2104_v24 = vadd.f32 %v4404_v19, %v2103_v36 }
 0x529   :  { %v3168_v8 = vpop.f32.mrf.mxu0 }
 0x52a   :  { %2198 = vst [vmem:[%s4550_s16 + $0x180] sm:$0xff] %v2104_v24  ;;  %v2119_v39 = vadd.f32 %v3168_v8, %v4404_v19 }
 0x52b   :  { %v2113_v12 = vpop.f32.mrf.mxu0 }
 0x52c   :  { %2201 = vst [vmem:[%s4550_s16 + $0x1c8] sm:$0xff] %v2119_v39  ;;  %v2114_v61 = vadd.f32 %v4404_v19, %v2113_v12 }
 0x52d   :  { %v3171_v40 = vpop.f32.mrf.mxu0 }
 0x52e   :  { %2200 = vst [vmem:[%s4550_s16 + $0x1b0] sm:$0xff] %v2114_v61  ;;  %v2129_v11 = vadd.f32 %v3171_v40, %v4404_v19 }
 0x52f   :  { %v2123_v6 = vpop.f32.mrf.mxu0 }
 0x530   :  { %2203 = vst [vmem:[%s4550_s16 + $0x1f8] sm:$0xff] %v2129_v11  ;;  %v2124_v25 = vadd.f32 %v4404_v19, %v2123_v6 }
 0x531   :  { %v3174_v38 = vpop.f32.mrf.mxu0 }
 0x532   :  { %2202 = vst [vmem:[%s4550_s16 + $0x1e0] sm:$0xff] %v2124_v25  ;;  %v2139_v44 = vadd.f32 %v3174_v38, %v4404_v19 }
 0x533   :  { %v2133_v45 = vpop.f32.mrf.mxu0 }
 0x534   :  { %2205 = vst [vmem:[%s4550_s16 + $0x228] sm:$0xff] %v2139_v44  ;;  %v2134_v23 = vadd.f32 %v4404_v19, %v2133_v45 }
 0x535   :  { %v3177_v43 = vpop.f32.mrf.mxu0 }
 0x536   :  { %2204 = vst [vmem:[%s4550_s16 + $0x210] sm:$0xff] %v2134_v23  ;;  %v2149_v48 = vadd.f32 %v3177_v43, %v4404_v19 }
 0x537   :  { %v2143_v46 = vpop.f32.mrf.mxu0 }
 0x538   :  { %2207 = vst [vmem:[%s4550_s16 + $0x258] sm:$0xff] %v2149_v48  ;;  %v2144_v47 = vadd.f32 %v4404_v19, %v2143_v46 }
 0x539   :  { %v3180_v2 = vpop.f32.mrf.mxu0 }
 0x53a   :  { %2206 = vst [vmem:[%s4550_s16 + $0x240] sm:$0xff] %v2144_v47  ;;  %v2159_v42 = vadd.f32 %v3180_v2, %v4404_v19 }
 0x53b   :  { %v2153_v30 = vpop.f32.mrf.mxu0 }
 0x53c   :  { %2209 = vst [vmem:[%s4550_s16 + $0x288] sm:$0xff] %v2159_v42  ;;  %v2154_v51 = vadd.f32 %v4404_v19, %v2153_v30 }
 0x53d   :  { %v3183_v53 = vpop.f32.mrf.mxu0 }
 0x53e   :  { %2208 = vst [vmem:[%s4550_s16 + $0x270] sm:$0xff] %v2154_v51  ;;  %v2169_v55 = vadd.f32 %v3183_v53, %v4404_v19 }
 0x53f   :  { %v2163_v56 = vpop.f32.mrf.mxu0 }
 0x540   :  { %2211 = vst [vmem:[%s4550_s16 + $0x2b8] sm:$0xff] %v2169_v55  ;;  %v2164_v59 = vadd.f32 %v4404_v19, %v2163_v56 }
 0x541   :  { %v3186_v35 = vpop.f32.mrf.mxu0 }
 0x542   :  { %2210 = vst [vmem:[%s4550_s16 + $0x2a0] sm:$0xff] %v2164_v59  ;;  %v2179_v17 = vadd.f32 %v3186_v35, %v4404_v19 }
 0x543   :  { %v2173_v60 = vpop.f32.mrf.mxu0 }
 0x544   :  { %2213 = vst [vmem:[%s4550_s16 + $0x2e8] sm:$0xff] %v2179_v17  ;;  %v2174_v1 = vadd.f32 %v4404_v19, %v2173_v60 }
 0x546   :  { %2212 = vst [vmem:[%s4550_s16 + $0x2d0] sm:$0xff] %v2174_v1 }
 0x547   :  { %2282 = vsyncpa [#allocation3], 1 }
 0x548   :  { %2283 = vsyncpa [#allocation5], 1 }

</bundles_post_ra>
